<compile_context>
chip_gen: v7x
topology: tpu7x:2x2x1
jax: 0.10.0
libtpu: 0.0.40
codegen_flags: <defaults>
</compile_context>

<pallas_src>
import functools
import math

import jax
import jax.numpy as jnp
from jax import lax
from jax.experimental import pallas as pl
from jax.experimental.pallas import tpu as pltpu

LN_EPS = 1e-5
NEG_INF = -1e9


# ----------------------------- in-kernel helpers -----------------------------

def _layernorm(x, gamma, beta):
    mu = jnp.mean(x, axis=-1, keepdims=True)
    var = jnp.mean(jnp.square(x - mu), axis=-1, keepdims=True)
    return (x - mu) * lax.rsqrt(var + LN_EPS) * gamma + beta


def _gelu_tanh(x):
    # tanh-approx GELU: the transcendental goes to the EUP slot instead of a 12-op
    # VALU erf polynomial.  Max abs deviation from exact erf-GELU ~1e-3.
    c = math.sqrt(2.0 / math.pi)
    return 0.5 * x * (1.0 + jnp.tanh(c * (x + 0.044715 * (x * x * x))))


# ------------------------------ Pallas kernels -------------------------------

def fused_gpt2_stack_kernel(emb_ref, wpe_ref, mask_ref,
                            ln1_g_ref, ln1_b_ref, qkv_w_ref, qkv_b_ref,
                            proj_w_ref, proj_b_ref,
                            ln2_g_ref, ln2_b_ref, fc_w_ref, fc_b_ref,
                            fc2_w_ref, fc2_b_ref,
                            x_ref, bias_ref, *, n_heads):
    """All GPT-2 blocks for one batch row.

    grid = (B, L).  x_ref (the output) is VMEM-resident across the layer axis and
    carries the activations; per-layer weight refs are the layer-`l` slice of the
    stacked (L, ...) weight arrays (double-buffered by the pipeline)."""
    layer = pl.program_id(1)
    _, S, D = x_ref.shape
    H = n_heads
    hd = D // H
    scale = 1.0 / math.sqrt(hd)

    @pl.when(layer == 0)
    def _init():
        # Fold the position-embedding add into the first fused step.
        x_ref[...] = emb_ref[...] + wpe_ref[...][None, :, :]
        # Combined causal + key-padding bias, built once per batch row (f32).
        row = lax.broadcasted_iota(jnp.int32, (S, S), 0)
        col = lax.broadcasted_iota(jnp.int32, (S, S), 1)
        causal = jnp.where(col <= row, 0.0, NEG_INF)        # (S, S)
        pad = (1.0 - mask_ref[...]) * NEG_INF                # (1, S)
        bias_ref[...] = causal + pad                         # (S, S)

    x = x_ref[...]                                           # (1, S, D) f32, resident

    # ---------------- pre-LN causal self-attention ----------------
    h = _layernorm(x, ln1_g_ref[...], ln1_b_ref[...]).reshape(S, D)
    qkv = jnp.dot(h.astype(jnp.bfloat16), qkv_w_ref[...],
                  preferred_element_type=jnp.float32) + qkv_b_ref[...]       # (S, 3D)

    # heads to the leading (batch) axis -> batched 3-D contractions on the MXU
    q = pltpu.einshape("shd->hsd", qkv[:, 0 * D:1 * D].reshape(S, H, hd)).astype(jnp.bfloat16)
    k = pltpu.einshape("shd->hsd", qkv[:, 1 * D:2 * D].reshape(S, H, hd)).astype(jnp.bfloat16)
    v = pltpu.einshape("shd->hsd", qkv[:, 2 * D:3 * D].reshape(S, H, hd)).astype(jnp.bfloat16)

    s = jnp.einsum('hqd,hkd->hqk', q, k,
                   preferred_element_type=jnp.float32) * scale               # (H, S, S) f32
    s = s + bias_ref[...][None, :, :]
    s = s - jnp.max(s, axis=-1, keepdims=True)
    p = jnp.exp(s)
    p = p * pl.reciprocal(jnp.sum(p, axis=-1, keepdims=True), approx=True)
    ctx = jnp.einsum('hqk,hkd->hqd', p.astype(jnp.bfloat16), v,
                     preferred_element_type=jnp.float32)                     # (H, S, hd)
    ctx = pltpu.einshape("hsd->shd", ctx).reshape(S, D)

    attn = jnp.dot(ctx.astype(jnp.bfloat16), proj_w_ref[...],
                   preferred_element_type=jnp.float32) + proj_b_ref[...]     # (S, D)
    x = x + attn.reshape(1, S, D)

    # ----------------------------- pre-LN MLP -----------------------------
    h = _layernorm(x, ln2_g_ref[...], ln2_b_ref[...]).reshape(S, D)
    m = jnp.dot(h.astype(jnp.bfloat16), fc_w_ref[...],
                preferred_element_type=jnp.float32) + fc_b_ref[...]          # (S, 4D)
    m = _gelu_tanh(m)
    mlp = jnp.dot(m.astype(jnp.bfloat16), fc2_w_ref[...],
                  preferred_element_type=jnp.float32) + fc2_b_ref[...]       # (S, D)
    x_ref[...] = x + mlp.reshape(1, S, D)


def lnf_logits_loss_kernel(x_ref, lnf_g_ref, lnf_b_ref, pred_w_ref, tok_ref,
                           logits_ref, logz_ref, tgt_ref):
    """ln_f + predict_token (no bias) + fused per-row logsumexp / target-logit gather
    (so the loss never re-reads the (B,S,V) logits from HBM)."""
    _, S, D = x_ref.shape
    V = pred_w_ref.shape[1]

    x = _layernorm(x_ref[...], lnf_g_ref[...], lnf_b_ref[...])               # (1, S, D)
    logits = jnp.dot(x.reshape(S, D).astype(jnp.bfloat16), pred_w_ref[...],
                     preferred_element_type=jnp.float32)                     # (S, V)
    logits_ref[...] = logits.reshape(1, S, V)

    m = jnp.max(logits, axis=-1, keepdims=True)                              # (S, 1)
    se = jnp.sum(jnp.exp(logits - m), axis=-1, keepdims=True)
    logz_ref[...] = (m + jnp.log(se)).reshape(1, S, 1)

    tgt = tok_ref[...].reshape(S, 1)                                         # int32, shifted targets
    col = lax.broadcasted_iota(jnp.int32, (S, V), 1)
    tgt_logit = jnp.sum(jnp.where(col == tgt, logits, 0.0), axis=-1, keepdims=True)
    tgt_ref[...] = tgt_logit.reshape(1, S, 1)


# ------------------------------- block specs ----------------------------------

def _wspec(d0, d1):
    """Stacked per-layer weight: leading L axis indexed by the layer grid axis and
    squeezed out of the kernel view; pipeline double-buffers it one layer ahead."""
    return pl.BlockSpec((pl.Squeezed(), d0, d1), lambda b, l: (l, 0, 0))


# --------------------------------- wrapper ------------------------------------

class GatoPolicyPallas:
    """Synthetic-weight re-implementation of GatoPolicy.forward on TPU Pallas."""

    def __init__(self, embed_dim=32, layers=2, heads=4, context_len=16,
                 text_tokens=128, continuous_tokens=64, discrete_tokens=64, seed=0):
        assert embed_dim % heads == 0
        self.embed_dim = embed_dim
        self.layers = layers
        self.heads = heads
        self.context_len = context_len
        self.vocab_size = text_tokens + continuous_tokens + discrete_tokens   # 256 (lane-dense)

        D, L = embed_dim, layers
        keys = list(jax.random.split(jax.random.PRNGKey(seed), 4 * L + 2))

        def nrm(shape):
            return 0.02 * jax.random.normal(keys.pop(), shape, jnp.float32)

        self.wpe = nrm((context_len, D))                     # GPT-2 position embedding (f32)

        qkv_w, proj_w, fc_w, fc2_w = [], [], [], []
        for _ in range(L):
            qkv_w.append(nrm((D, 3 * D)))
            proj_w.append(nrm((D, D)))
            fc_w.append(nrm((D, 4 * D)))
            fc2_w.append(nrm((4 * D, D)))
        # MXU weights stored in bf16 (f32 accumulation in-kernel); LN/bias in f32.
        self.qkv_w = jnp.stack(qkv_w).astype(jnp.bfloat16)   # (L, D, 3D)
        self.proj_w = jnp.stack(proj_w).astype(jnp.bfloat16) # (L, D, D)
        self.fc_w = jnp.stack(fc_w).astype(jnp.bfloat16)     # (L, D, 4D)
        self.fc2_w = jnp.stack(fc2_w).astype(jnp.bfloat16)   # (L, 4D, D)

        self.ln1_g = jnp.ones((L, 1, D), jnp.float32)
        self.ln1_b = jnp.zeros((L, 1, D), jnp.float32)
        self.qkv_b = jnp.zeros((L, 1, 3 * D), jnp.float32)
        self.proj_b = jnp.zeros((L, 1, D), jnp.float32)
        self.ln2_g = jnp.ones((L, 1, D), jnp.float32)
        self.ln2_b = jnp.zeros((L, 1, D), jnp.float32)
        self.fc_b = jnp.zeros((L, 1, 4 * D), jnp.float32)
        self.fc2_b = jnp.zeros((L, 1, D), jnp.float32)

        self.lnf_g = jnp.ones((1, D), jnp.float32)
        self.lnf_b = jnp.zeros((1, D), jnp.float32)
        self.pred_w = nrm((D, self.vocab_size)).astype(jnp.bfloat16)   # predict_token (no bias)

    def forward(self, token_embeddings, tokens, token_target_masks, token_masks,
                compute_loss=False):
        B, S, D = token_embeddings.shape
        V = self.vocab_size
        L, H = self.layers, self.heads
        assert S <= self.context_len

        mask_f = token_masks.astype(jnp.float32)
        mask3 = mask_f.reshape(B, 1, S)
        wpe = self.wpe[:S]

        # ---- fused transformer stack: one pallas_call, grid = (batch, layer) ----
        # NOTE: tile sizes here are whole-(S,D) blocks; for v7x (64 MiB VMEM) at
        # production sizes re-derive the activation tile / weight buffer depth.
        x = pl.pallas_call(
            functools.partial(fused_gpt2_stack_kernel, n_heads=H),
            out_shape=jax.ShapeDtypeStruct((B, S, D), jnp.float32),
            grid=(B, L),
            in_specs=[
                pl.BlockSpec((1, S, D), lambda b, l: (b, 0, 0)),              # token_embeddings
                pl.BlockSpec((S, D), lambda b, l: (0, 0)),                    # wpe
                pl.BlockSpec((pl.Squeezed(), 1, S), lambda b, l: (b, 0, 0)),  # attention mask
                _wspec(1, D), _wspec(1, D),                                   # ln1 g/b
                _wspec(D, 3 * D), _wspec(1, 3 * D),                           # qkv w/b
                _wspec(D, D), _wspec(1, D),                                   # proj w/b
                _wspec(1, D), _wspec(1, D),                                   # ln2 g/b
                _wspec(D, 4 * D), _wspec(1, 4 * D),                           # fc w/b
                _wspec(4 * D, D), _wspec(1, D),                               # fc2 w/b
            ],
            out_specs=pl.BlockSpec((1, S, D), lambda b, l: (b, 0, 0)),        # resident across l
            scratch_shapes=[pltpu.VMEM((S, S), jnp.float32)],                 # causal+pad bias
            compiler_params=pltpu.CompilerParams(
                dimension_semantics=("parallel", "arbitrary"),
                vmem_limit_bytes=32 * 1024 * 1024),
        )(token_embeddings, wpe, mask3,
          self.ln1_g, self.ln1_b, self.qkv_w, self.qkv_b,
          self.proj_w, self.proj_b, self.ln2_g, self.ln2_b,
          self.fc_w, self.fc_b, self.fc2_w, self.fc2_b)

        # Shifted targets so row t is paired with tokens[t+1] (torch CE shift).
        if tokens is None:
            tok_shift = jnp.zeros((B, S), jnp.int32)
        else:
            tok_shift = jnp.concatenate(
                [tokens[:, 1:], jnp.zeros((B, 1), tokens.dtype)], axis=1).astype(jnp.int32)
        tok3 = tok_shift.reshape(B, 1, S)

        # ---- ln_f + predict_token + fused logsumexp / target-logit ----
        logits, logz, tgt_logit = pl.pallas_call(
            lnf_logits_loss_kernel,
            out_shape=(jax.ShapeDtypeStruct((B, S, V), jnp.float32),
                       jax.ShapeDtypeStruct((B, S, 1), jnp.float32),
                       jax.ShapeDtypeStruct((B, S, 1), jnp.float32)),
            grid=(B,),
            in_specs=[
                pl.BlockSpec((1, S, D), lambda b: (b, 0, 0)),
                pl.BlockSpec((1, D), lambda b: (0, 0)),
                pl.BlockSpec((1, D), lambda b: (0, 0)),
                pl.BlockSpec((D, V), lambda b: (0, 0)),
                pl.BlockSpec((pl.Squeezed(), 1, S), lambda b: (b, 0, 0)),
            ],
            out_specs=(pl.BlockSpec((1, S, V), lambda b: (b, 0, 0)),
                       pl.BlockSpec((1, S, 1), lambda b: (b, 0, 0)),
                       pl.BlockSpec((1, S, 1), lambda b: (b, 0, 0))),
            compiler_params=pltpu.CompilerParams(
                dimension_semantics=("parallel",),
                vmem_limit_bytes=32 * 1024 * 1024),
        )(x, self.lnf_g, self.lnf_b, self.pred_w, tok3)

        loss = None
        if compute_loss:
            # ce[b, t] = logsumexp(logits[b, t]) - logits[b, t, tokens[b, t+1]]
            ce = (logz - tgt_logit)[:, :, 0][:, :-1]                        # (B, S-1)
            lm = mask_f[:, :-1] * token_target_masks.astype(jnp.float32)[:, 1:]
            loss = jnp.sum(ce * lm) / jnp.maximum(jnp.sum(lm), 1.0)

        return logits, loss


# TODO(synk): tokenize_input_dicts (variable-length python lists, HF text tokenizer,
# image patch ResNet embedding, mu-law tokenizers) is host-side preprocessing with no
# clean Pallas equivalent; this implements the forward(**kwargs) compute path
# (dropout is inference-mode identity).


if __name__ == "__main__":
    B, S = 2, 8
    D, HEADS, LAYERS = 32, 4, 2
    CONTEXT = 16

    policy = GatoPolicyPallas(embed_dim=D, layers=LAYERS, heads=HEADS,
                              context_len=CONTEXT, text_tokens=128,
                              continuous_tokens=64, discrete_tokens=64, seed=0)

    key = jax.random.PRNGKey(0)
    k1, k2, k3 = jax.random.split(key, 3)
    token_embeddings = jax.random.normal(k1, (B, S, D), jnp.float32)
    tokens = jax.random.randint(k2, (B, S), 0, policy.vocab_size, jnp.int32)
    token_target_masks = (jax.random.uniform(k3, (B, S)) > 0.3).astype(jnp.float32)
    # left-padded attention masks (batch 1 has 2 padding tokens), as produced by
    # tokenize_input_dicts.
    token_masks = jnp.array([[1.0] * S,
                             [0.0, 0.0] + [1.0] * (S - 2)], jnp.float32)

    logits, loss = policy.forward(token_embeddings, tokens, token_target_masks,
                                  token_masks, compute_loss=True)
    jax.block_until_ready((logits, loss))
    assert logits.shape == (B, S, policy.vocab_size)
    assert logits.dtype == jnp.float32
    assert bool(jnp.isfinite(loss))
    print("KERNEL_OK")
</pallas_src>

<mosaic_0001>
module attributes {stable_mosaic.version = 11 : i64} {
  func.func @fused_gpt2_stack_kernel(%arg0: i32, %arg1: i32, %arg2: memref<1x8x32xf32, #tpu.memory_space<vmem>>, %arg3: memref<8x32xf32, #tpu.memory_space<vmem>>, %arg4: memref<1x1x8xf32, #tpu.memory_space<vmem>>, %arg5: memref<1x1x32xf32, #tpu.memory_space<vmem>>, %arg6: memref<1x1x32xf32, #tpu.memory_space<vmem>>, %arg7: memref<1x32x96xbf16, #tpu.memory_space<vmem>>, %arg8: memref<1x1x96xf32, #tpu.memory_space<vmem>>, %arg9: memref<1x32x32xbf16, #tpu.memory_space<vmem>>, %arg10: memref<1x1x32xf32, #tpu.memory_space<vmem>>, %arg11: memref<1x1x32xf32, #tpu.memory_space<vmem>>, %arg12: memref<1x1x32xf32, #tpu.memory_space<vmem>>, %arg13: memref<1x32x128xbf16, #tpu.memory_space<vmem>>, %arg14: memref<1x1x128xf32, #tpu.memory_space<vmem>>, %arg15: memref<1x128x32xbf16, #tpu.memory_space<vmem>>, %arg16: memref<1x1x32xf32, #tpu.memory_space<vmem>>, %arg17: memref<1x8x32xf32, #tpu.memory_space<vmem>>, %arg18: memref<8x8xf32, #tpu.memory_space<vmem>>) attributes {dimension_semantics = [#tpu.dimension_semantics<parallel>, #tpu.dimension_semantics<arbitrary>], iteration_bounds = array<i64: 2, 2>, scalar_prefetch = 0 : i64, scratch_operands = 1 : i64, tpu.core_type = #tpu.core_type<tc>, window_params = [{transform_indices = @transform_0, window_bounds = array<i64: 1, 8, 32>}, {pipeline_mode = #tpu.pipeline_mode<synchronous>, transform_indices = @transform_1, window_bounds = array<i64: 8, 32>}, {transform_indices = @transform_2, window_bounds = array<i64: 1, 1, 8>}, {transform_indices = @transform_3, window_bounds = array<i64: 1, 1, 32>}, {transform_indices = @transform_4, window_bounds = array<i64: 1, 1, 32>}, {transform_indices = @transform_5, window_bounds = array<i64: 1, 32, 96>}, {transform_indices = @transform_6, window_bounds = array<i64: 1, 1, 96>}, {transform_indices = @transform_7, window_bounds = array<i64: 1, 32, 32>}, {transform_indices = @transform_8, window_bounds = array<i64: 1, 1, 32>}, {transform_indices = @transform_9, window_bounds = array<i64: 1, 1, 32>}, {transform_indices = @transform_10, window_bounds = array<i64: 1, 1, 32>}, {transform_indices = @transform_11, window_bounds = array<i64: 1, 32, 128>}, {transform_indices = @transform_12, window_bounds = array<i64: 1, 1, 128>}, {transform_indices = @transform_13, window_bounds = array<i64: 1, 128, 32>}, {transform_indices = @transform_14, window_bounds = array<i64: 1, 1, 32>}, {transform_indices = @transform_15, window_bounds = array<i64: 1, 8, 32>}]} {
    %c0_i32 = arith.constant 0 : i32
    %0 = arith.cmpi eq, %arg1, %c0_i32 : i32
    %1 = arith.extui %0 : i1 to i32
    %c0_i32_0 = arith.constant 0 : i32
    %2 = arith.cmpi ne, %1, %c0_i32_0 : i32
    scf.if %2 {
      %c0_66 = arith.constant 0 : index
      %c0_67 = arith.constant 0 : index
      %c0_68 = arith.constant 0 : index
      %145 = vector.load %arg2[%c0_66, %c0_67, %c0_68] : memref<1x8x32xf32, #tpu.memory_space<vmem>>, vector<1x8x32xf32>
      %c0_69 = arith.constant 0 : index
      %c0_70 = arith.constant 0 : index
      %146 = vector.load %arg3[%c0_69, %c0_70] : memref<8x32xf32, #tpu.memory_space<vmem>>, vector<8x32xf32>
      %147 = vector.shape_cast %146 : vector<8x32xf32> to vector<1x8x32xf32>
      %148 = arith.addf %145, %147 : vector<1x8x32xf32>
      %c0_71 = arith.constant 0 : index
      %c0_72 = arith.constant 0 : index
      %c0_73 = arith.constant 0 : index
      %149 = vector.load %arg17[%c0_71, %c0_72, %c0_73] : memref<1x8x32xf32, #tpu.memory_space<vmem>>, vector<1x8x32xf32>
      tpu.vector_store %arg17[%c0_71, %c0_72, %c0_73], %148 {strides = array<i32>} : memref<1x8x32xf32, #tpu.memory_space<vmem>>, vector<1x8x32xf32>,
      %150 = tpu.iota {dimensions = array<i32: 0>} : vector<8x8xi32>
      %151 = tpu.iota {dimensions = array<i32: 1>} : vector<8x8xi32>
      %152 = arith.cmpi sle, %151, %150 : vector<8x8xi32>
      %cst_74 = arith.constant 0.000000e+00 : f32
      %cst_75 = arith.constant -1.000000e+09 : f32
      %153 = vector.broadcast %cst_74 : f32 to vector<8x8xf32>
      %154 = vector.broadcast %cst_75 : f32 to vector<8x8xf32>
      %155 = arith.select %152, %153, %154 : vector<8x8xi1>, vector<8x8xf32>
      %c0_76 = arith.constant 0 : index
      %c0_77 = arith.constant 0 : index
      %c0_78 = arith.constant 0 : index
      %156 = vector.load %arg4[%c0_76, %c0_77, %c0_78] : memref<1x1x8xf32, #tpu.memory_space<vmem>>, vector<1x1x8xf32>
      %157 = vector.shape_cast %156 : vector<1x1x8xf32> to vector<1x8xf32>
      %cst_79 = arith.constant 1.000000e+00 : f32
      %158 = vector.broadcast %cst_79 : f32 to vector<1x8xf32>
      %159 = arith.subf %158, %157 : vector<1x8xf32>
      %cst_80 = arith.constant -1.000000e+09 : f32
      %160 = vector.broadcast %cst_80 : f32 to vector<1x8xf32>
      %161 = arith.mulf %159, %160 : vector<1x8xf32>
      %162 = vector.broadcast %161 : vector<1x8xf32> to vector<8x8xf32>
      %163 = arith.addf %155, %162 : vector<8x8xf32>
      %c0_81 = arith.constant 0 : index
      %c0_82 = arith.constant 0 : index
      %164 = vector.load %arg18[%c0_81, %c0_82] : memref<8x8xf32, #tpu.memory_space<vmem>>, vector<8x8xf32>
      tpu.vector_store %arg18[%c0_81, %c0_82], %163 {strides = array<i32>} : memref<8x8xf32, #tpu.memory_space<vmem>>, vector<8x8xf32>,
    } else {
    }
    %c0 = arith.constant 0 : index
    %c0_1 = arith.constant 0 : index
    %c0_2 = arith.constant 0 : index
    %3 = vector.load %arg17[%c0, %c0_1, %c0_2] : memref<1x8x32xf32, #tpu.memory_space<vmem>>, vector<1x8x32xf32>
    %c0_3 = arith.constant 0 : index
    %c0_4 = arith.constant 0 : index
    %c0_5 = arith.constant 0 : index
    %4 = vector.load %arg5[%c0_3, %c0_4, %c0_5] : memref<1x1x32xf32, #tpu.memory_space<vmem>>, vector<1x1x32xf32>
    %5 = vector.shape_cast %4 : vector<1x1x32xf32> to vector<1x32xf32>
    %c0_6 = arith.constant 0 : index
    %c0_7 = arith.constant 0 : index
    %c0_8 = arith.constant 0 : index
    %6 = vector.load %arg6[%c0_6, %c0_7, %c0_8] : memref<1x1x32xf32, #tpu.memory_space<vmem>>, vector<1x1x32xf32>
    %7 = vector.shape_cast %6 : vector<1x1x32xf32> to vector<1x32xf32>
    %cst = arith.constant dense<0.000000e+00> : vector<1x8xf32>
    %8 = vector.multi_reduction <add>, %3, %cst [2] : vector<1x8x32xf32> to vector<1x8xf32>
    %9 = vector.shape_cast %8 : vector<1x8xf32> to vector<1x8x1xf32>
    %cst_9 = arith.constant 3.200000e+01 : f32
    %10 = vector.broadcast %cst_9 : f32 to vector<1x8x1xf32>
    %11 = arith.divf %9, %10 : vector<1x8x1xf32>
    %12 = vector.broadcast %11 : vector<1x8x1xf32> to vector<1x8x32xf32>
    %13 = arith.subf %3, %12 : vector<1x8x32xf32>
    %14 = arith.mulf %13, %13 : vector<1x8x32xf32>
    %cst_10 = arith.constant dense<0.000000e+00> : vector<1x8xf32>
    %15 = vector.multi_reduction <add>, %14, %cst_10 [2] : vector<1x8x32xf32> to vector<1x8xf32>
    %16 = vector.shape_cast %15 : vector<1x8xf32> to vector<1x8x1xf32>
    %cst_11 = arith.constant 3.200000e+01 : f32
    %17 = vector.broadcast %cst_11 : f32 to vector<1x8x1xf32>
    %18 = arith.divf %16, %17 : vector<1x8x1xf32>
    %19 = vector.broadcast %11 : vector<1x8x1xf32> to vector<1x8x32xf32>
    %20 = arith.subf %3, %19 : vector<1x8x32xf32>
    %cst_12 = arith.constant 9.99999974E-6 : f32
    %21 = vector.broadcast %cst_12 : f32 to vector<1x8x1xf32>
    %22 = arith.addf %18, %21 : vector<1x8x1xf32>
    %23 = math.rsqrt %22 : vector<1x8x1xf32>
    %24 = vector.broadcast %23 : vector<1x8x1xf32> to vector<1x8x32xf32>
    %25 = arith.mulf %20, %24 : vector<1x8x32xf32>
    %26 = vector.shape_cast %5 : vector<1x32xf32> to vector<1x1x32xf32>
    %27 = vector.broadcast %26 : vector<1x1x32xf32> to vector<1x8x32xf32>
    %28 = arith.mulf %25, %27 : vector<1x8x32xf32>
    %29 = vector.shape_cast %7 : vector<1x32xf32> to vector<1x1x32xf32>
    %30 = vector.broadcast %29 : vector<1x1x32xf32> to vector<1x8x32xf32>
    %31 = arith.addf %28, %30 : vector<1x8x32xf32>
    %32 = vector.shape_cast %31 : vector<1x8x32xf32> to vector<8x32xf32>
    %33 = arith.truncf %32 : vector<8x32xf32> to vector<8x32xbf16>
    %c0_13 = arith.constant 0 : index
    %c0_14 = arith.constant 0 : index
    %c0_15 = arith.constant 0 : index
    %34 = vector.load %arg7[%c0_13, %c0_14, %c0_15] : memref<1x32x96xbf16, #tpu.memory_space<vmem>>, vector<1x32x96xbf16>
    %35 = vector.shape_cast %34 : vector<1x32x96xbf16> to vector<32x96xbf16>
    %cst_16 = arith.constant dense<0.000000e+00> : vector<8x96xf32>
    %36 = tpu.matmul %33, %35, %cst_16 {dimension_numbers = #tpu.dot_dimension_numbers<[1], [0], [0], [1], [0, 0, 1, 1], [], []>} : vector<8x32xbf16>, vector<32x96xbf16>, vector<8x96xf32> -> vector<8x96xf32>
    %c0_17 = arith.constant 0 : index
    %c0_18 = arith.constant 0 : index
    %c0_19 = arith.constant 0 : index
    %37 = vector.load %arg8[%c0_17, %c0_18, %c0_19] : memref<1x1x96xf32, #tpu.memory_space<vmem>>, vector<1x1x96xf32>
    %38 = vector.shape_cast %37 : vector<1x1x96xf32> to vector<1x96xf32>
    %39 = vector.broadcast %38 : vector<1x96xf32> to vector<8x96xf32>
    %40 = arith.addf %36, %39 : vector<8x96xf32>
    %41 = vector.extract_strided_slice %40 {offsets = [0, 0], sizes = [8, 32], strides = [1, 1]} : vector<8x96xf32> to vector<8x32xf32>
    %42 = vector.shape_cast %41 : vector<8x32xf32> to vector<8x4x8xf32>
    %43 = tpu.transpose %42, [1, 0, 2] : vector<8x4x8xf32> -> vector<4x8x8xf32>
    %44 = arith.truncf %43 : vector<4x8x8xf32> to vector<4x8x8xbf16>
    %45 = vector.extract_strided_slice %40 {offsets = [0, 32], sizes = [8, 32], strides = [1, 1]} : vector<8x96xf32> to vector<8x32xf32>
    %46 = vector.shape_cast %45 : vector<8x32xf32> to vector<8x4x8xf32>
    %47 = tpu.transpose %46, [1, 0, 2] : vector<8x4x8xf32> -> vector<4x8x8xf32>
    %48 = arith.truncf %47 : vector<4x8x8xf32> to vector<4x8x8xbf16>
    %49 = vector.extract_strided_slice %40 {offsets = [0, 64], sizes = [8, 32], strides = [1, 1]} : vector<8x96xf32> to vector<8x32xf32>
    %50 = vector.shape_cast %49 : vector<8x32xf32> to vector<8x4x8xf32>
    %51 = tpu.transpose %50, [1, 0, 2] : vector<8x4x8xf32> -> vector<4x8x8xf32>
    %52 = arith.truncf %51 : vector<4x8x8xf32> to vector<4x8x8xbf16>
    "tpu.trace_start"() <{level = 10 : i32, message = "hqd,hkd->hqk"}> : () -> ()
    %cst_20 = arith.constant dense<0.000000e+00> : vector<4x8x8xf32>
    %53 = tpu.matmul %44, %48, %cst_20 {dimension_numbers = #tpu.dot_dimension_numbers<[2], [2], [1], [1], [0, 0, 0, 1, 1, 1], [0], [0]>} : vector<4x8x8xbf16>, vector<4x8x8xbf16>, vector<4x8x8xf32> -> vector<4x8x8xf32>
    "tpu.trace_stop"() : () -> ()
    %cst_21 = arith.constant 0.353553385 : f32
    %54 = vector.broadcast %cst_21 : f32 to vector<4x8x8xf32>
    %55 = arith.mulf %53, %54 : vector<4x8x8xf32>
    %c0_22 = arith.constant 0 : index
    %c0_23 = arith.constant 0 : index
    %56 = vector.load %arg18[%c0_22, %c0_23] : memref<8x8xf32, #tpu.memory_space<vmem>>, vector<8x8xf32>
    %57 = vector.shape_cast %56 : vector<8x8xf32> to vector<1x8x8xf32>
    %58 = vector.broadcast %57 : vector<1x8x8xf32> to vector<4x8x8xf32>
    %59 = arith.addf %55, %58 : vector<4x8x8xf32>
    %cst_24 = arith.constant dense<0xFF800000> : vector<4x8xf32>
    %60 = vector.multi_reduction <maximumf>, %59, %cst_24 [2] : vector<4x8x8xf32> to vector<4x8xf32>
    %61 = vector.shape_cast %60 : vector<4x8xf32> to vector<4x8x1xf32>
    %62 = vector.broadcast %61 : vector<4x8x1xf32> to vector<4x8x8xf32>
    %63 = arith.subf %59, %62 : vector<4x8x8xf32>
    %64 = math.exp %63 : vector<4x8x8xf32>
    %cst_25 = arith.constant dense<0.000000e+00> : vector<4x8xf32>
    %65 = vector.multi_reduction <add>, %64, %cst_25 [2] : vector<4x8x8xf32> to vector<4x8xf32>
    %66 = vector.shape_cast %65 : vector<4x8xf32> to vector<4x8x1xf32>
    %67 = tpu.reciprocal %66 {approx = true} : vector<4x8x1xf32> -> vector<4x8x1xf32>
    %68 = vector.broadcast %67 : vector<4x8x1xf32> to vector<4x8x8xf32>
    %69 = arith.mulf %64, %68 : vector<4x8x8xf32>
    %70 = arith.truncf %69 : vector<4x8x8xf32> to vector<4x8x8xbf16>
    "tpu.trace_start"() <{level = 10 : i32, message = "hqk,hkd->hqd"}> : () -> ()
    %cst_26 = arith.constant dense<0.000000e+00> : vector<4x8x8xf32>
    %71 = tpu.matmul %70, %52, %cst_26 {dimension_numbers = #tpu.dot_dimension_numbers<[2], [1], [1], [2], [0, 0, 0, 1, 1, 2], [0], [0]>} : vector<4x8x8xbf16>, vector<4x8x8xbf16>, vector<4x8x8xf32> -> vector<4x8x8xf32>
    "tpu.trace_stop"() : () -> ()
    %72 = tpu.transpose %71, [1, 0, 2] : vector<4x8x8xf32> -> vector<8x4x8xf32>
    %73 = vector.shape_cast %72 : vector<8x4x8xf32> to vector<8x32xf32>
    %74 = arith.truncf %73 : vector<8x32xf32> to vector<8x32xbf16>
    %c0_27 = arith.constant 0 : index
    %c0_28 = arith.constant 0 : index
    %c0_29 = arith.constant 0 : index
    %75 = vector.load %arg9[%c0_27, %c0_28, %c0_29] : memref<1x32x32xbf16, #tpu.memory_space<vmem>>, vector<1x32x32xbf16>
    %76 = vector.shape_cast %75 : vector<1x32x32xbf16> to vector<32x32xbf16>
    %cst_30 = arith.constant dense<0.000000e+00> : vector<8x32xf32>
    %77 = tpu.matmul %74, %76, %cst_30 {dimension_numbers = #tpu.dot_dimension_numbers<[1], [0], [0], [1], [0, 0, 1, 1], [], []>} : vector<8x32xbf16>, vector<32x32xbf16>, vector<8x32xf32> -> vector<8x32xf32>
    %c0_31 = arith.constant 0 : index
    %c0_32 = arith.constant 0 : index
    %c0_33 = arith.constant 0 : index
    %78 = vector.load %arg10[%c0_31, %c0_32, %c0_33] : memref<1x1x32xf32, #tpu.memory_space<vmem>>, vector<1x1x32xf32>
    %79 = vector.shape_cast %78 : vector<1x1x32xf32> to vector<1x32xf32>
    %80 = vector.broadcast %79 : vector<1x32xf32> to vector<8x32xf32>
    %81 = arith.addf %77, %80 : vector<8x32xf32>
    %82 = vector.shape_cast %81 : vector<8x32xf32> to vector<1x8x32xf32>
    %83 = arith.addf %3, %82 : vector<1x8x32xf32>
    %c0_34 = arith.constant 0 : index
    %c0_35 = arith.constant 0 : index
    %c0_36 = arith.constant 0 : index
    %84 = vector.load %arg11[%c0_34, %c0_35, %c0_36] : memref<1x1x32xf32, #tpu.memory_space<vmem>>, vector<1x1x32xf32>
    %85 = vector.shape_cast %84 : vector<1x1x32xf32> to vector<1x32xf32>
    %c0_37 = arith.constant 0 : index
    %c0_38 = arith.constant 0 : index
    %c0_39 = arith.constant 0 : index
    %86 = vector.load %arg12[%c0_37, %c0_38, %c0_39] : memref<1x1x32xf32, #tpu.memory_space<vmem>>, vector<1x1x32xf32>
    %87 = vector.shape_cast %86 : vector<1x1x32xf32> to vector<1x32xf32>
    %cst_40 = arith.constant dense<0.000000e+00> : vector<1x8xf32>
    %88 = vector.multi_reduction <add>, %83, %cst_40 [2] : vector<1x8x32xf32> to vector<1x8xf32>
    %89 = vector.shape_cast %88 : vector<1x8xf32> to vector<1x8x1xf32>
    %cst_41 = arith.constant 3.200000e+01 : f32
    %90 = vector.broadcast %cst_41 : f32 to vector<1x8x1xf32>
    %91 = arith.divf %89, %90 : vector<1x8x1xf32>
    %92 = vector.broadcast %91 : vector<1x8x1xf32> to vector<1x8x32xf32>
    %93 = arith.subf %83, %92 : vector<1x8x32xf32>
    %94 = arith.mulf %93, %93 : vector<1x8x32xf32>
    %cst_42 = arith.constant dense<0.000000e+00> : vector<1x8xf32>
    %95 = vector.multi_reduction <add>, %94, %cst_42 [2] : vector<1x8x32xf32> to vector<1x8xf32>
    %96 = vector.shape_cast %95 : vector<1x8xf32> to vector<1x8x1xf32>
    %cst_43 = arith.constant 3.200000e+01 : f32
    %97 = vector.broadcast %cst_43 : f32 to vector<1x8x1xf32>
    %98 = arith.divf %96, %97 : vector<1x8x1xf32>
    %99 = vector.broadcast %91 : vector<1x8x1xf32> to vector<1x8x32xf32>
    %100 = arith.subf %83, %99 : vector<1x8x32xf32>
    %cst_44 = arith.constant 9.99999974E-6 : f32
    %101 = vector.broadcast %cst_44 : f32 to vector<1x8x1xf32>
    %102 = arith.addf %98, %101 : vector<1x8x1xf32>
    %103 = math.rsqrt %102 : vector<1x8x1xf32>
    %104 = vector.broadcast %103 : vector<1x8x1xf32> to vector<1x8x32xf32>
    %105 = arith.mulf %100, %104 : vector<1x8x32xf32>
    %106 = vector.shape_cast %85 : vector<1x32xf32> to vector<1x1x32xf32>
    %107 = vector.broadcast %106 : vector<1x1x32xf32> to vector<1x8x32xf32>
    %108 = arith.mulf %105, %107 : vector<1x8x32xf32>
    %109 = vector.shape_cast %87 : vector<1x32xf32> to vector<1x1x32xf32>
    %110 = vector.broadcast %109 : vector<1x1x32xf32> to vector<1x8x32xf32>
    %111 = arith.addf %108, %110 : vector<1x8x32xf32>
    %112 = vector.shape_cast %111 : vector<1x8x32xf32> to vector<8x32xf32>
    %113 = arith.truncf %112 : vector<8x32xf32> to vector<8x32xbf16>
    %c0_45 = arith.constant 0 : index
    %c0_46 = arith.constant 0 : index
    %c0_47 = arith.constant 0 : index
    %114 = vector.load %arg13[%c0_45, %c0_46, %c0_47] : memref<1x32x128xbf16, #tpu.memory_space<vmem>>, vector<1x32x128xbf16>
    %115 = vector.shape_cast %114 : vector<1x32x128xbf16> to vector<32x128xbf16>
    %cst_48 = arith.constant dense<0.000000e+00> : vector<8x128xf32>
    %116 = tpu.matmul %113, %115, %cst_48 {dimension_numbers = #tpu.dot_dimension_numbers<[1], [0], [0], [1], [0, 0, 1, 1], [], []>} : vector<8x32xbf16>, vector<32x128xbf16>, vector<8x128xf32> -> vector<8x128xf32>
    %c0_49 = arith.constant 0 : index
    %c0_50 = arith.constant 0 : index
    %c0_51 = arith.constant 0 : index
    %117 = vector.load %arg14[%c0_49, %c0_50, %c0_51] : memref<1x1x128xf32, #tpu.memory_space<vmem>>, vector<1x1x128xf32>
    %118 = vector.shape_cast %117 : vector<1x1x128xf32> to vector<1x128xf32>
    %119 = vector.broadcast %118 : vector<1x128xf32> to vector<8x128xf32>
    %120 = arith.addf %116, %119 : vector<8x128xf32>
    %cst_52 = arith.constant 5.000000e-01 : f32
    %121 = vector.broadcast %cst_52 : f32 to vector<8x128xf32>
    %122 = arith.mulf %121, %120 : vector<8x128xf32>
    %123 = arith.mulf %120, %120 : vector<8x128xf32>
    %124 = arith.mulf %123, %120 : vector<8x128xf32>
    %cst_53 = arith.constant 4.471500e-02 : f32
    %125 = vector.broadcast %cst_53 : f32 to vector<8x128xf32>
    %126 = arith.mulf %125, %124 : vector<8x128xf32>
    %127 = arith.addf %120, %126 : vector<8x128xf32>
    %cst_54 = arith.constant 0.797884583 : f32
    %128 = vector.broadcast %cst_54 : f32 to vector<8x128xf32>
    %129 = arith.mulf %128, %127 : vector<8x128xf32>
    %130 = math.tanh %129 : vector<8x128xf32>
    %cst_55 = arith.constant 1.000000e+00 : f32
    %131 = vector.broadcast %cst_55 : f32 to vector<8x128xf32>
    %132 = arith.addf %131, %130 : vector<8x128xf32>
    %133 = arith.mulf %122, %132 : vector<8x128xf32>
    %134 = arith.truncf %133 : vector<8x128xf32> to vector<8x128xbf16>
    %c0_56 = arith.constant 0 : index
    %c0_57 = arith.constant 0 : index
    %c0_58 = arith.constant 0 : index
    %135 = vector.load %arg15[%c0_56, %c0_57, %c0_58] : memref<1x128x32xbf16, #tpu.memory_space<vmem>>, vector<1x128x32xbf16>
    %136 = vector.shape_cast %135 : vector<1x128x32xbf16> to vector<128x32xbf16>
    %cst_59 = arith.constant dense<0.000000e+00> : vector<8x32xf32>
    %137 = tpu.matmul %134, %136, %cst_59 {dimension_numbers = #tpu.dot_dimension_numbers<[1], [0], [0], [1], [0, 0, 1, 1], [], []>} : vector<8x128xbf16>, vector<128x32xbf16>, vector<8x32xf32> -> vector<8x32xf32>
    %c0_60 = arith.constant 0 : index
    %c0_61 = arith.constant 0 : index
    %c0_62 = arith.constant 0 : index
    %138 = vector.load %arg16[%c0_60, %c0_61, %c0_62] : memref<1x1x32xf32, #tpu.memory_space<vmem>>, vector<1x1x32xf32>
    %139 = vector.shape_cast %138 : vector<1x1x32xf32> to vector<1x32xf32>
    %140 = vector.broadcast %139 : vector<1x32xf32> to vector<8x32xf32>
    %141 = arith.addf %137, %140 : vector<8x32xf32>
    %142 = vector.shape_cast %141 : vector<8x32xf32> to vector<1x8x32xf32>
    %143 = arith.addf %83, %142 : vector<1x8x32xf32>
    %c0_63 = arith.constant 0 : index
    %c0_64 = arith.constant 0 : index
    %c0_65 = arith.constant 0 : index
    %144 = vector.load %arg17[%c0_63, %c0_64, %c0_65] : memref<1x8x32xf32, #tpu.memory_space<vmem>>, vector<1x8x32xf32>
    tpu.vector_store %arg17[%c0_63, %c0_64, %c0_65], %143 {strides = array<i32>} : memref<1x8x32xf32, #tpu.memory_space<vmem>>, vector<1x8x32xf32>,
    return
  }
  func.func @transform_0(%arg0: i32, %arg1: i32) -> (i32, i32, i32) {
    %c0_i32 = arith.constant 0 : i32
    %c0_i32_0 = arith.constant 0 : i32
    %c0_i32_1 = arith.constant 0 : i32
    return %arg0, %c0_i32, %c0_i32_0 : i32, i32, i32
  }
  func.func @transform_1(%arg0: i32, %arg1: i32) -> (i32, i32) {
    %c0_i32 = arith.constant 0 : i32
    %c0_i32_0 = arith.constant 0 : i32
    %c0_i32_1 = arith.constant 0 : i32
    return %c0_i32, %c0_i32_0 : i32, i32
  }
  func.func @transform_2(%arg0: i32, %arg1: i32) -> (i32, i32, i32) {
    %c0_i32 = arith.constant 0 : i32
    %c0_i32_0 = arith.constant 0 : i32
    %c0_i32_1 = arith.constant 0 : i32
    return %arg0, %c0_i32, %c0_i32_0 : i32, i32, i32
  }
  func.func @transform_3(%arg0: i32, %arg1: i32) -> (i32, i32, i32) {
    %c0_i32 = arith.constant 0 : i32
    %c0_i32_0 = arith.constant 0 : i32
    %c0_i32_1 = arith.constant 0 : i32
    return %arg1, %c0_i32, %c0_i32_0 : i32, i32, i32
  }
  func.func @transform_4(%arg0: i32, %arg1: i32) -> (i32, i32, i32) {
    %c0_i32 = arith.constant 0 : i32
    %c0_i32_0 = arith.constant 0 : i32
    %c0_i32_1 = arith.constant 0 : i32
    return %arg1, %c0_i32, %c0_i32_0 : i32, i32, i32
  }
  func.func @transform_5(%arg0: i32, %arg1: i32) -> (i32, i32, i32) {
    %c0_i32 = arith.constant 0 : i32
    %c0_i32_0 = arith.constant 0 : i32
    %c0_i32_1 = arith.constant 0 : i32
    return %arg1, %c0_i32, %c0_i32_0 : i32, i32, i32
  }
  func.func @transform_6(%arg0: i32, %arg1: i32) -> (i32, i32, i32) {
    %c0_i32 = arith.constant 0 : i32
    %c0_i32_0 = arith.constant 0 : i32
    %c0_i32_1 = arith.constant 0 : i32
    return %arg1, %c0_i32, %c0_i32_0 : i32, i32, i32
  }
  func.func @transform_7(%arg0: i32, %arg1: i32) -> (i32, i32, i32) {
    %c0_i32 = arith.constant 0 : i32
    %c0_i32_0 = arith.constant 0 : i32
    %c0_i32_1 = arith.constant 0 : i32
    return %arg1, %c0_i32, %c0_i32_0 : i32, i32, i32
  }
  func.func @transform_8(%arg0: i32, %arg1: i32) -> (i32, i32, i32) {
    %c0_i32 = arith.constant 0 : i32
    %c0_i32_0 = arith.constant 0 : i32
    %c0_i32_1 = arith.constant 0 : i32
    return %arg1, %c0_i32, %c0_i32_0 : i32, i32, i32
  }
  func.func @transform_9(%arg0: i32, %arg1: i32) -> (i32, i32, i32) {
    %c0_i32 = arith.constant 0 : i32
    %c0_i32_0 = arith.constant 0 : i32
    %c0_i32_1 = arith.constant 0 : i32
    return %arg1, %c0_i32, %c0_i32_0 : i32, i32, i32
  }
  func.func @transform_10(%arg0: i32, %arg1: i32) -> (i32, i32, i32) {
    %c0_i32 = arith.constant 0 : i32
    %c0_i32_0 = arith.constant 0 : i32
    %c0_i32_1 = arith.constant 0 : i32
    return %arg1, %c0_i32, %c0_i32_0 : i32, i32, i32
  }
  func.func @transform_11(%arg0: i32, %arg1: i32) -> (i32, i32, i32) {
    %c0_i32 = arith.constant 0 : i32
    %c0_i32_0 = arith.constant 0 : i32
    %c0_i32_1 = arith.constant 0 : i32
    return %arg1, %c0_i32, %c0_i32_0 : i32, i32, i32
  }
  func.func @transform_12(%arg0: i32, %arg1: i32) -> (i32, i32, i32) {
    %c0_i32 = arith.constant 0 : i32
    %c0_i32_0 = arith.constant 0 : i32
    %c0_i32_1 = arith.constant 0 : i32
    return %arg1, %c0_i32, %c0_i32_0 : i32, i32, i32
  }
  func.func @transform_13(%arg0: i32, %arg1: i32) -> (i32, i32, i32) {
    %c0_i32 = arith.constant 0 : i32
    %c0_i32_0 = arith.constant 0 : i32
    %c0_i32_1 = arith.constant 0 : i32
    return %arg1, %c0_i32, %c0_i32_0 : i32, i32, i32
  }
  func.func @transform_14(%arg0: i32, %arg1: i32) -> (i32, i32, i32) {
    %c0_i32 = arith.constant 0 : i32
    %c0_i32_0 = arith.constant 0 : i32
    %c0_i32_1 = arith.constant 0 : i32
    return %arg1, %c0_i32, %c0_i32_0 : i32, i32, i32
  }
  func.func @transform_15(%arg0: i32, %arg1: i32) -> (i32, i32, i32) {
    %c0_i32 = arith.constant 0 : i32
    %c0_i32_0 = arith.constant 0 : i32
    %c0_i32_1 = arith.constant 0 : i32
    return %arg0, %c0_i32, %c0_i32_0 : i32, i32, i32
  }
}

</mosaic_0001>

<bundles_post_ra>
// kernel: tpu_custom_call.1
= control target key start
LH: loop header
LB: loop body
LE: loop exit
PB: predicated region body
PF: predicated region fallthrough
CT: control target
= control target key end

     0   :  { %s3331_s0 = inlined_call_operand.vmem [shape: f32[2,8,32], index: 0, kind: input, shape index: {}]   ;;  %s3332_s1 = inlined_call_operand.vmem [shape: f32[8,32], index: 1, kind: input, shape index: {}]   ;;  %s3333_s2 = inlined_call_operand.vmem [shape: f32[2,1,8], index: 2, kind: input, shape index: {}]   ;;  %s3334_s3 = inlined_call_operand.vmem [shape: f32[2,1,32], index: 3, kind: input, shape index: {}]   ;;  %s3335_s4 = inlined_call_operand.vmem [shape: f32[2,1,32], index: 4, kind: input, shape index: {}]   ;;  %s3336_s5 = inlined_call_operand.vmem [shape: bf16[2,32,96], index: 5, kind: input, shape index: {}]   ;;  %s3337_s6 = inlined_call_operand.vmem [shape: f32[2,1,96], index: 6, kind: input, shape index: {}]   ;;  %s3338_s7 = inlined_call_operand.vmem [shape: bf16[2,32,32], index: 7, kind: input, shape index: {}]   ;;  %s3339_s8 = inlined_call_operand.vmem [shape: f32[2,1,32], index: 8, kind: input, shape index: {}]   ;;  %s3340_s9 = inlined_call_operand.vmem [shape: f32[2,1,32], index: 9, kind: input, shape index: {}]   ;;  %s3341_s10 = inlined_call_operand.vmem [shape: f32[2,1,32], index: 10, kind: input, shape index: {}]   ;;  %s3342_s11 = inlined_call_operand.vmem [shape: bf16[2,32,128], index: 11, kind: input, shape index: {}]   ;;  %s3343_s12 = inlined_call_operand.vmem [shape: f32[2,1,128], index: 12, kind: input, shape index: {}]   ;;  %s3344_s13 = inlined_call_operand.vmem [shape: bf16[2,128,32], index: 13, kind: input, shape index: {}]   ;;  %s3345_s14 = inlined_call_operand.vmem [shape: f32[2,1,32], index: 14, kind: input, shape index: {}]   ;;  %s3346_s15 = inlined_call_operand.hbm [shape: f32[2,8,32], index: 15, kind: output, shape index: {}]  }
   0x1   :  { %3362 = sst [smem:[#allocation19_spill]] %s3331_s0 }
   0x2   :  { %3363 = sst [smem:[#allocation20_spill]] %s3332_s1 }
   0x3   :  { %3364 = sst [smem:[#allocation21_spill]] %s3333_s2 }
   0x4   :  { %3365 = sst [smem:[#allocation22_spill]] %s3336_s5 }
   0x5   :  { %3366 = sst [smem:[#allocation23_spill]] %s3338_s7 }
   0x6   :  { %3367 = sst [smem:[#allocation24_spill]] %s3339_s8 }
   0x7   :  { %3368 = sst [smem:[#allocation25_spill]] %s3340_s9 }
   0x8   :  { %3369 = sst [smem:[#allocation26_spill]] %s3343_s12 }
   0x9   :  { %3370 = sst [smem:[#allocation27_spill]] %s3344_s13 }
   0xa   :  { %3371 = sst [smem:[#allocation28_spill]] %s3345_s14 }
   0xb   :  { %3372 = sst [smem:[#allocation29_spill]] %s3346_s15 }
   0xc   :  { %20 = vsyncpa [#allocation4], 0 }
   0xd   :  { %22 = vsyncpa [#allocation4 + $0x1], 0  ;;  %s2870_s18 = smov 0   ;;  %s2872_s19 = smov 0  }
   0xe   :  { %s2874_s20 = smov 0   ;;  %s2876_s21 = smov 0  }
   0xf   :  { %s2878_s22 = smov 0   ;;  %s2880_s23 = smov 0  }
  0x10   :  { %s2882_s24 = smov 0   ;;  %s2884_s25 = smov 0  }
  0x11 LB: > { %3373 = sst [smem:[#allocation6_spill]] %s2746_s18  ;;  %s2369_s26 = sadd.s32 4294967295, %s2774_s25   ;;  %s2774_s25 = sphi %s2884_s25, %s28_s25   ;;  %s2770_s24 = sphi %s2882_s24, %s3423_s24   ;;  %s2766_s23 = sphi %s2880_s23, %s3422_s23   ;;  %s2762_s22 = sphi %s2878_s22, %s3421_s22   ;;  %s2758_s21 = sphi %s2876_s21, %s3420_s21   ;;  %s2754_s20 = sphi %s2874_s20, %s3419_s20   ;;  %s2750_s19 = sphi %s2872_s19, %s3418_s19   ;;  %s2746_s18 = sphi %s2870_s18, %s3417_s18  }
  0x12   : > { %3374 = sst [smem:[#allocation7_spill]] %s2750_s19  ;;  %s2370_s27 = sadd.s32 4294967294, %s2774_s25  }
  0x13   : > { %3375 = sst [smem:[#allocation8_spill]] %s2754_s20  ;;  %s37_s28 = sadd.s32 1, %s2766_s23 }
  0x14   : > { %3376 = sst [smem:[#allocation9_spill]] %s2758_s21  ;;  %p38_p0 = scmp.ge.s32.totalorder %s37_s28, 2 }
  0x15   : > { %3377 = sst [smem:[#allocation10_spill]] %s2762_s22  ;;  %s40_s29 = sadd.s32 1, %s2770_s24 }
  0x16   : > { %3378 = sst [smem:[#allocation11_spill]] %s2766_s23  ;;  %p442_p1 = scmp.ne.s32.totalorder %s2754_s20, %s2750_s19 }
  0x17   : > { %3379 = sst [smem:[#allocation12_spill]] %s2770_s24  ;;  %p443_p2 = scmp.eq.s32.totalorder %s2369_s26, 3 }
  0x18   : > { %3380 = sst [smem:[#allocation13_spill]] %s2774_s25  ;;  %s3425_s28 = smov (%p38_p0, %s37_s28), 0 }
  0x19   : > { %3381 = sst [smem:[#allocation14_spill]] %s3425_s28  ;;  %s3427_s29 = smov (!%p38_p0, %s40_s29), %s2770_s24 }
  0x1a   : > { %p2919_p3 = por %p443_p2, %p442_p1  ;;  %p448_p4 = scmp.ne.s32.totalorder %s2750_s19, %s2746_s18 }
  0x1b   : > { %p42_p5 = scmp.ge.s32.totalorder %s3427_s29, 2  ;;  %p449_p6 = scmp.eq.s32.totalorder %s2370_s27, 3 }
  0x1c   : > { %s3382_s30 = scalar_select %p2919_p3, 1, 0 }
  0x1d   : > { %p2373_p7 = scmp.ge.s32.totalorder %s2774_s25, 1  ;;  %p563_p8 = scmp.lt.s32.totalorder %s2774_s25, 5 }
  0x1e   : > { %3383 = sst [smem:[#allocation15_spill]] %s3382_s30  ;;  %s3429_s29 = smov (%p42_p5, %s3427_s29), 0 }
  0x1f   : > { %3384 = sst [smem:[#allocation16_spill]] %s3429_s29  ;;  %p2929_p9 = por %p449_p6, %p448_p4 }
  0x20   : > { %p564_p10 = pnand %p2373_p7, %p563_p8  ;;  %s429_s17 = ssub.s32 %s2770_s24, %s3429_s29 }
  0x21   : > { %s3385_s16 = scalar_select %p2929_p9, 1, 0 }
  0x22   : > { %s432_s26 = sadd.s32 1, %s2754_s20  ;;  %p430_p11 = scmp.eq.s32.totalorder %s429_s17, 0 }
  0x23   : > { %3386 = sst [smem:[#allocation17_spill]] %s3385_s16  ;;  %567 = sbr.rel (%p564_p10) target bundleno = 2817 (0xb01), region = 80 }
  0x24   : > { %s2937_s28 = scalar_select %p430_p11, %s2754_s20, %s432_s26  }
  0x25   : > { %s3352_s27 = sand.u32 (!%p564_p10), 1, %s2750_s19   ;;  %p657_p12 = scmp.lt.s32.totalorder (!%p564_p10), %s2762_s22, 1 }
  0x26   : > { %3387 = sst [smem:[#allocation18_spill]] %s2937_s28  ;;  %s2374_s23 = sshll.u32 (!%p564_p10), %s3352_s27, 3 }
  0x27   : > { %p664_p13 = scmp.lt.s32.totalorder (!%p564_p10), %s2758_s21, 1  ;;  %s3388_s2 = sld [smem:[#allocation21_spill]] (!%p564_p10) }
  0x28   : > { %s3389_s0 = sld [smem:[#allocation19_spill]] (!%p564_p10)  ;;  %s3390_s5 = sld [smem:[#allocation22_spill]] (!%p564_p10) }
  0x29   : > { %s3391_s7 = sld [smem:[#allocation23_spill]] (!%p564_p10)  ;;  %s3394_s26 = sld [smem:[#allocation26_spill]] (!%p564_p10) }
  0x2a   : > { %s658_s18 = scalar_select %p657_p12, %s2762_s22, 1 }
  0x2b   : > { %s2946_s16 = scalar_select %p664_p13, %s2758_s21, 1 }
  0x2c   : > { %s2375_s17 = sshll.u32 %s658_s18, 3  ;;  %s3395_s19 = sld [smem:[#allocation28_spill]] }
  0x2d   : > { %s663_s24 = scalar_lea.vmem %s3388_s2, %s658_s18  ;;  %s2430_s21 = sshll.u32 %s2946_s16, 4 }
  0x2e   : > { %s660_s20 = scalar_lea.vmem %s3389_s0, %s2375_s17  ;;  %s2966_s12 = scalar_lea.vmem %s3390_s5, %s2430_s21 }
  0x2f   : > { %s2975_s17 = scalar_lea.vmem %s3391_s7, %s2430_s21  ;;  %s691_s0 = scalar_lea.vmem %s3341_s10, %s2946_s16 }
  0x30   : > { %s2992_s18 = scalar_lea.vmem %s3342_s11, %s2430_s21  ;;  %s699_s5 = scalar_lea.vmem %s3394_s26, %s2946_s16 }
  0x31   : > { %s2433_s7 = sshll.u32 %s2946_s16, 6  ;;  %s3396_s30 = sld [smem:[#allocation27_spill]] }
  0x32   : > { %s707_s8 = scalar_lea.vmem %s3395_s19, %s2946_s16  ;;  %s3008_s13 = scalar_lea.vmem [#allocation3], %s2374_s23 }
  0x33   : > { %s3397_s14 = sld [smem:[#allocation9_spill]] }
  0x37   : > { %s3006_s9 = scalar_lea.vmem %s3396_s30, %s2433_s7 }
  0x39   : > { %p2384_p0 = scmp.ne.s32.totalorder %s3397_s14, 0 }
  0x3a   : > { %v713_v0 = vld [vmem:[%s660_s20] sm:$0xff] (!%p2384_p0)  ;;  %s3398_s29 = sld [smem:[#allocation20_spill]] (!%p2384_p0)  ;;  %vm716_vm0 = vcmask (!%p2384_p0), 261120   ;;  %v718_v2 = vlaneseq (!%p2384_p0)  ;;  %v2776_v10 = vmov (!%p2384_p0), -1e+09   ;;  %vm734_vm2 = vcmask (!%p2384_p0), 64512  }
  0x3b   : > { %712 = sbr.rel (%p2384_p0) target bundleno = 69 (0x45), region = 84  ;;  %v724_v4 = vld [vmem:[%s663_s24] sm:$0x1] (!%p2384_p0) }
  0x3c   : > { %v719_v5 = vshrl.u32 (!%p2384_p0), %v718_v2, 7  ;;  %v721_v6 = vand.u32 (!%p2384_p0), 127, %v718_v2  ;;  %v725_v7 = vsub.f32 (!%p2384_p0), 1.0, %v724_v4 }
  0x3e   : > { %vm722_vm1 = vcmp.le.s32.totalorder (!%p2384_p0), %v721_v6, %v719_v5  ;;  %v726_v8 = vmul.f32 (!%p2384_p0), -1e+09, %v725_v7  ;;  %v730_v9 = vsub.s32 (!%p2384_p0), 0, %v719_v5 }
  0x3f   : > { %v723_v11 = vsel (!%p2384_p0), %vm722_vm1, 0.0, %v2776_v10 }
  0x40   : > { %v714_v1 = vld [vmem:[%s3398_s29] sm:$0xff] (!%p2384_p0)  ;;  %v731_v12 = vrot.slane (!%p2384_p0), %v726_v8, %v730_v9 }
  0x41   : > { %v715_v3 = vadd.f32 (!%p2384_p0), %v714_v1, %v713_v0 }
  0x42   : > { %v733_v13 = vadd.f32 %v731_v12, %v723_v11 }
  0x43   : > { %717 = vst.msk [vmem:[%s3008_s13] sm:$0xff] %vm716_vm0, %v715_v3 }
  0x44   : > { %735 = vst.msk [vmem:[#allocation2] sm:$0xff] %vm734_vm2, %v733_v13 }
  0x45 PF: > { %vm739_vm3 = vcmask 261120   ;;  %v2644_v21 = vld [vmem:[%s2966_s12] sm:$0xff]   ;;  %v2777_v22 = vmov 0.0   ;;  %vm2778_vm4 = vmmov 0   ;;  %v2645_v23 = vld [vmem:[%s2966_s12 + $0x8] sm:$0xff]   ;;  %s3399_s12 = scalar_lea.vmem %s3334_s3, %s2946_s16  ;;  %s3400_s30 = scalar_lea.vmem %s3335_s4, %s2946_s16  ;;  %v850_v45 = vlaneseq }
  0x46   : > { %2468 = vmatprep.subr.bf16.mxu0 %v2777_v22  ;;  %2472 = vmatprep.mubr.msk.bf16.mxu0 %vm2778_vm4, %v2777_v22  ;;  %v2385_v28 = vld [vmem:[%s3399_s12] ss:$0 sm:$0xff]  ;;  %s3401_s28 = scalar_lea.vmem %s3337_s6, %s2946_s16  ;;  %s2779_s27 = smov 104   ;;  %v2783_v43 = vmov 1983009808   ;;  %vm1289_vm5 = vcmask 64512  }
  0x47   : > { %2469 = vmatpush3.bf16.msra.mxu0 %v2644_v21  ;;  %2488 = vmatprep.subr.bf16.mxu1 %v2777_v22  ;;  %v2386_v30 = vld [vmem:[%s3400_s30] ss:$0 sm:$0xff]  ;;  %s2780_s15 = smov 120   ;;  %s2781_s25 = smov 112   ;;  %v848_v44 = vunpack.c.l.s4 %v2783_v43  ;;  %v851_v47 = vshrl.u32 %v850_v45, 7  ;;  %vm1534_vm6 = vcmask 1043456  }
  0x48   : > { %2470 = vmatprep.subr.bf16.mxu0 %v2777_v22  ;;  %2490 = vmatprep.mubr.msk.bf16.mxu1 %vm2778_vm4, %v2777_v22  ;;  %v2387_v34 = vld [vmem:[%s3401_s28] ss:$0 sm:$0xff]  ;;  %s2782_s1 = smov 96   ;;  %v2784_v49 = vmov 1934713408   ;;  %s2785_s22 = smov 64  }
  0x49   : > { %v849_v46 = vunpack.c.0.s8 %v848_v44  ;;  %v880_v50 = vunpack.c.l.s4 %v2784_v49  ;;  %s2787_s14 = smov 8   ;;  %s2788_s2 = smov 24   ;;  %vm1865_vm7 = vcmask 130048   ;;  %vm1867_vm8 = vcmask 195584  }
  0x4a   : > { %v3016_v14 = vld [vmem:[%s3008_s13] sm:$0xff]  ;;  %s3402_s7 = sld [smem:[#allocation24_spill]]  ;;  %s3404_s24 = sld [smem:[#allocation25_spill]] }
  0x4b   : > { %v740_v15 = vsel %vm739_vm3, %v3016_v14, 0.0  ;;  %2471 = vmatpush3.bf16.msra.mxu0 %v2645_v23  ;;  %v3069_v53 = vsub.s32 %v849_v46, %v851_v47  ;;  %v881_v57 = vunpack.c.0.s8 %v880_v50  ;;  %s3411_s21 = sld [smem:[#allocation29_spill]]  ;;  %s2789_s12 = smov [#allocation3]  }
  0x4c   : > { %741 = vadd.xlane.f32.xlu0 %v740_v15  ;;  %2476 = vmatprep.subr.bf16.mxu0 %v2777_v22  ;;  %s2684_s23 = sshll.u32 %s2789_s12, 4  ;;  %s2685_s23 = int_to_ptr.vmem [resolvable:$false] %s2684_s23 }
  0x4d   : > { %v3079_v63 = vsub.s32 %v881_v57, %v851_v47 }
  0x50   : > { %s3403_s20 = scalar_lea.vmem %s3402_s7, %s2946_s16  ;;  %s3405_s30 = scalar_lea.vmem %s3404_s24, %s2946_s16 }
  0x51   : > { %s3412_s29 = smov %s3411_s21  ;;  %s2686_s24 = scalar_lea.vmem %s2685_s23, 256 }
  0xd9   : > { %v742_v16 = vpop.xlane.xlu0 %741 }
  0xda   : > { %v744_v17 = vmul.f32 0.03125, %v742_v16 }
  0xdc   : > { %v745_v18 = vsub.f32 %v3016_v14, %v744_v17 }
  0xde   : > { %v746_v19 = vmul.f32 %v745_v18, %v745_v18 }
  0xe0   : > { %v747_v20 = vsel %vm739_vm3, %v746_v19, 0.0 }
  0xe1   : > { %748 = vadd.xlane.f32.xlu0 %v747_v20 }
 0x16e   : > { %v749_v24 = vpop.xlane.xlu0 %748 }
 0x16f   : > { %v750_v25 = vmul.f32 0.03125, %v749_v24 }
 0x171   : > { %v751_v26 = vadd.f32 1e-05, %v750_v25 }
 0x173   : > { %2658 = vrsqrt.f32 %v751_v26 }
 0x17d   : > { %v2659_v27 = vpop.eup %2658 }
 0x17e   : > { %v753_v29 = vmul.f32 %v2659_v27, %v745_v18 }
 0x180   : > { %v760_v31 = vmul.f32 %v2385_v28, %v753_v29 }
 0x182   : > { %v767_v32 = vadd.f32 %v2386_v30, %v760_v31 }
 0x184   : > { %v768_v33 = vpack.c.bf16 %v767_v32, %v767_v32 }
 0x186   : > { %2473 = vmatmul.mubr.msk.bf16.vlgmr.msra.gmra.mrb[0].mxu0 %vm739_vm3, %v768_v33 }
 0x187   : > { %2478 = vmatprep.mubr.msk.bf16.mxu0 %vm2778_vm4, %v2777_v22 }
 0x259   : > { %v829_v35 = vpop.f32.mrb[0].mxu0 }
 0x25a   : > { %v3050_v36 = vadd.f32 %v2387_v34, %v829_v35  ;;  %v2474_v37 = vpop.f32.mrb[1].mxu0 }
 0x25b   : > { %v832_v38 = vpop.f32.mrb[2].mxu0 }
 0x25c   : > { %842 = vrot.lane.b32.xlu0 %v3050_v36, %s2779_s27  ;;  %836 = vrot.lane.b32.xlu1 %v3050_v36, %s2780_s15  ;;  %v2475_v39 = vpop.f32.mrb[3].mxu0  ;;  %s3407_s27 = sld [smem:[#allocation10_spill]] }
 0x260   : > { %839 = vrot.lane.b32.xlu1 %v3050_v36, %s2781_s25 }
 0x264   : > { %985 = vrot.lane.b32.xlu1 %v3050_v36, %s2782_s1 }
 0x2ce   : > { %v3056_v40 = vpop.permute.xlu1 %836  ;;  %v3062_v42 = vpop.permute.xlu0 %842 }
 0x2cf   : > { %987 = vrot.lane.b32.xlu1 %v3056_v40, %s2782_s1  ;;  %v861_v54 = vcombine.low %v3056_v40, %v3062_v42  ;;  %v862_v55 = vcombine.high %v3056_v40, %v3062_v42 }
 0x2d1   : > { %v869_v60 = vrot.slane %v861_v54, %v3069_v53  ;;  %v876_v61 = vrot.slane %v862_v55, %v3069_v53 }
 0x2d2   : > { %v3059_v41 = vpop.permute.xlu1 %839 }
 0x2d3   : > { %989 = vrot.lane.b32.xlu1 %v3059_v41, %s2782_s1  ;;  %v845_v51 = vcombine.low %v3050_v36, %v3059_v41  ;;  %v846_v52 = vcombine.high %v3050_v36, %v3059_v41 }
 0x2d5   : > { %v853_v58 = vrot.slane %v845_v51, %v3069_v53  ;;  %v860_v59 = vrot.slane %v846_v52, %v3069_v53 }
 0x2d6   : > { %v986_v48 = vpop.permute.xlu1 %985 }
 0x2d7   : > { %991 = vrot.lane.b32.xlu1 %v3062_v42, %s2782_s1  ;;  %v877_v0 = vcombine.low %v853_v58, %v869_v60  ;;  %v878_v1 = vcombine.high %v853_v58, %v869_v60  ;;  %v893_v2 = vcombine.low %v860_v59, %v876_v61  ;;  %v894_v3 = vcombine.high %v860_v59, %v876_v61 }
 0x2d9   : > { %v885_v9 = vrot.slane %v877_v0, %v3079_v63  ;;  %v892_v10 = vrot.slane %v878_v1, %v3079_v63  ;;  %v901_v11 = vrot.slane %v893_v2, %v3079_v63  ;;  %v908_v12 = vrot.slane %v894_v3, %v3079_v63 }
 0x2db   : > { %v913_v23 = vcombine.low %v885_v9, %v892_v10  ;;  %v2391_v24 = vcombine.high %v885_v9, %v892_v10  ;;  %v929_v25 = vcombine.low %v901_v11, %v908_v12  ;;  %v2392_v26 = vcombine.high %v901_v11, %v908_v12 }
 0x2dd   : > { %v920_v35 = vrot.slane %v913_v23, %v3069_v53  ;;  %v928_v37 = vrot.slane %v2391_v24, %v3069_v53  ;;  %v936_v38 = vrot.slane %v929_v25, %v3069_v53  ;;  %v944_v39 = vrot.slane %v2392_v26, %v3069_v53  ;;  %v1478_v25 = vld [vmem:[#allocation2] sm:$0xff] }
 0x2df   : > { %v945_v51 = vcombine.low %v920_v35, %v928_v37  ;;  %v961_v52 = vcombine.low %v936_v38, %v944_v39  ;;  %v946_v54 = vcombine.high %v920_v35, %v928_v37  ;;  %v962_v55 = vcombine.high %v936_v38, %v944_v39 }
 0x2e1   : > { %v969_v0 = vrot.slane %v961_v52, %v3079_v63  ;;  %v960_v3 = vrot.slane %v946_v54, %v3079_v63 }
 0x341   : > { %v988_v56 = vpop.permute.xlu1 %987 }
 0x345   : > { %v990_v62 = vpop.permute.xlu1 %989 }
 0x346   : > { %v997_v4 = vcombine.low %v986_v48, %v990_v62  ;;  %v998_v5 = vcombine.high %v986_v48, %v990_v62  ;;  %v953_v62 = vrot.slane %v945_v51, %v3079_v63 }
 0x348   : > { %v1005_v13 = vrot.slane %v997_v4, %v3069_v53  ;;  %v1012_v15 = vrot.slane %v998_v5, %v3069_v53  ;;  %v976_v4 = vrot.slane %v962_v55, %v3079_v63 }
 0x349   : > { %v992_v6 = vpop.permute.xlu1 %991 }
 0x34a   : > { %v1013_v7 = vcombine.low %v988_v56, %v992_v6  ;;  %v1014_v8 = vcombine.high %v988_v56, %v992_v6  ;;  %v979_v9 = vcombine.low %v960_v3, %v976_v4 }
 0x34c   : > { %v1021_v16 = vrot.slane %v1013_v7, %v3069_v53  ;;  %v1028_v17 = vrot.slane %v1014_v8, %v3069_v53  ;;  %v977_v8 = vcombine.low %v953_v62, %v969_v0  ;;  %v983_v12 = vpack.c.bf16 %v979_v9, %v979_v9 }
 0x34e   : > { %v1029_v18 = vcombine.low %v1005_v13, %v1021_v16  ;;  %v1030_v19 = vcombine.high %v1005_v13, %v1021_v16  ;;  %v1045_v20 = vcombine.low %v1012_v15, %v1028_v17  ;;  %v1046_v21 = vcombine.high %v1012_v15, %v1028_v17 }
 0x34f   : > { %v981_v11 = vpack.c.bf16 %v977_v8, %v977_v8  ;;  %v978_v16 = vcombine.high %v953_v62, %v969_v0 }
 0x350   : > { %v1037_v27 = vrot.slane %v1029_v18, %v3079_v63  ;;  %v1044_v28 = vrot.slane %v1030_v19, %v3079_v63  ;;  %v1053_v29 = vrot.slane %v1045_v20, %v3079_v63  ;;  %v1060_v30 = vrot.slane %v1046_v21, %v3079_v63 }
 0x351   : > { %v982_v18 = vpack.c.bf16 %v978_v16, %v978_v16  ;;  %v980_v20 = vcombine.high %v960_v3, %v976_v4 }
 0x352   : > { %v1065_v31 = vcombine.low %v1037_v27, %v1044_v28  ;;  %v2393_v32 = vcombine.high %v1037_v27, %v1044_v28  ;;  %v1081_v33 = vcombine.low %v1053_v29, %v1060_v30  ;;  %v2394_v34 = vcombine.high %v1053_v29, %v1060_v30 }
 0x353   : > { %v984_v21 = vpack.c.bf16 %v980_v20, %v980_v20 }
 0x354   : > { %v1072_v43 = vrot.slane %v1065_v31, %v3069_v53  ;;  %v1080_v44 = vrot.slane %v2393_v32, %v3069_v53  ;;  %v1088_v45 = vrot.slane %v1081_v33, %v3069_v53  ;;  %v1096_v46 = vrot.slane %v2394_v34, %v3069_v53 }
 0x356   : > { %v1097_v47 = vcombine.low %v1072_v43, %v1080_v44  ;;  %v1113_v48 = vcombine.low %v1088_v45, %v1096_v46  ;;  %v1098_v49 = vcombine.high %v1072_v43, %v1080_v44  ;;  %v1114_v50 = vcombine.high %v1088_v45, %v1096_v46 }
 0x358   : > { %v1105_v56 = vrot.slane %v1097_v47, %v3079_v63  ;;  %v1121_v57 = vrot.slane %v1113_v48, %v3079_v63  ;;  %v1112_v58 = vrot.slane %v1098_v49, %v3079_v63  ;;  %v1128_v59 = vrot.slane %v1114_v50, %v3079_v63 }
 0x35a   : > { %v1129_v60 = vcombine.low %v1105_v56, %v1121_v57  ;;  %v1131_v61 = vcombine.low %v1112_v58, %v1128_v59  ;;  %v1130_v7 = vcombine.high %v1105_v56, %v1121_v57  ;;  %v1132_v15 = vcombine.high %v1112_v58, %v1128_v59 }
 0x35c   : > { %v1133_v1 = vpack.c.bf16 %v1129_v60, %v1129_v60  ;;  %v1135_v2 = vpack.c.bf16 %v1131_v61, %v1131_v61  ;;  %v1134_v10 = vpack.c.bf16 %v1130_v7, %v1130_v7  ;;  %v1136_v17 = vpack.c.bf16 %v1132_v15, %v1132_v15 }
 0x35e   : > { %v1294_v5 = vsel %vm1289_vm5, %v1133_v1, 0  ;;  %v1386_v6 = vsel %vm1289_vm5, %v1135_v2, 0  ;;  %v1340_v13 = vsel %vm1289_vm5, %v1134_v10, 0  ;;  %v1432_v19 = vsel %vm1289_vm5, %v1136_v17, 0 }
 0x35f   : > { %2477 = vmatpush3.bf16.xpose.msra.mxu0 %v1294_v5  ;;  %2489 = vmatpush3.bf16.xpose.msra.mxu1 %v1386_v6 }
 0x360   : > { %2482 = vmatprep.subr.bf16.mxu0 %v2777_v22  ;;  %2500 = vmatprep.subr.bf16.mxu1 %v2777_v22 }
 0x366   : > { %2479 = vmatmul.mubr.msk.bf16.vlgmr.msra.gmra.mrb[4].mxu0 %vm1289_vm5, %v981_v11  ;;  %2491 = vmatmul.mubr.msk.bf16.vlgmr.msra.gmra.mrb[0].mxu1 %vm1289_vm5, %v983_v12 }
 0x367   : > { %2483 = vmatpush3.bf16.xpose.msra.mxu0 %v1340_v13  ;;  %2484 = vmatprep.mubr.msk.bf16.mxu0 %vm2778_vm4, %v2777_v22 }
 0x368   : > { %2494 = vmatprep.subr.bf16.mxu0 %v2777_v22  ;;  %2502 = vmatprep.mubr.msk.bf16.mxu1 %vm2778_vm4, %v2777_v22 }
 0x36e   : > { %2485 = vmatmul.mubr.msk.bf16.vlgmr.msra.gmra.mrb[8].mxu0 %vm1289_vm5, %v982_v18 }
 0x36f   : > { %2495 = vmatpush3.bf16.xpose.msra.mxu0 %v1432_v19  ;;  %2496 = vmatprep.mubr.msk.bf16.mxu0 %vm2778_vm4, %v2777_v22 }
 0x370   : > { %2506 = vmatprep.subr.bf16.mxu0 %v2777_v22 }
 0x376   : > { %2497 = vmatmul.mubr.msk.bf16.vlgmr.msra.gmra.mrb[12].mxu0 %vm1289_vm5, %v984_v21 }
 0x377   : > { %2508 = vmatprep.mubr.msk.bf16.mxu0 %vm2778_vm4, %v2777_v22 }
 0x439   : > { %v1330_v23 = vpop.f32.mrb[4].mxu0  ;;  %v1422_v24 = vpop.f32.mrb[0].mxu1 }
 0x43a   : > { %v1474_v26 = vmul.f32 0.35355338, %v1330_v23  ;;  %v1476_v27 = vmul.f32 0.35355338, %v1422_v24  ;;  %v2480_v28 = vpop.f32.mrb[5].mxu0  ;;  %v2492_v29 = vpop.f32.mrb[1].mxu1 }
 0x43b   : > { %v1333_v30 = vpop.f32.mrb[6].mxu0  ;;  %v1425_v31 = vpop.f32.mrb[2].mxu1 }
 0x43c   : > { %v2481_v32 = vpop.f32.mrb[7].mxu0  ;;  %v2493_v33 = vpop.f32.mrb[3].mxu1  ;;  %v1479_v34 = vadd.f32 %v1478_v25, %v1474_v26  ;;  %v1481_v37 = vadd.f32 %v1478_v25, %v1476_v27 }
 0x43e   : > { %v1483_v35 = vsel %vm1289_vm5, %v1479_v34, -inf  ;;  %v1489_v44 = vsel %vm1289_vm5, %v1481_v37, -inf }
 0x43f   : > { %1484 = vmax.xlane.f32.xlu1 %v1483_v35 }
 0x441   : > { %v1376_v38 = vpop.f32.mrb[8].mxu0 }
 0x442   : > { %v1475_v39 = vmul.f32 0.35355338, %v1376_v38  ;;  %v2486_v43 = vpop.f32.mrb[9].mxu0 }
 0x443   : > { %1490 = vmax.xlane.f32.xlu1 %v1489_v44  ;;  %v1379_v45 = vpop.f32.mrb[10].mxu0 }
 0x444   : > { %v2487_v46 = vpop.f32.mrb[11].mxu0  ;;  %v1480_v47 = vadd.f32 %v1478_v25, %v1475_v39 }
 0x446   : > { %v1486_v48 = vsel %vm1289_vm5, %v1480_v47, -inf }
 0x447   : > { %1487 = vmax.xlane.f32.xlu0 %v1486_v48 }
 0x449   : > { %v1468_v49 = vpop.f32.mrb[12].mxu0 }
 0x44a   : > { %v1477_v50 = vmul.f32 0.35355338, %v1468_v49  ;;  %v2498_v51 = vpop.f32.mrb[13].mxu0 }
 0x44b   : > { %v1471_v52 = vpop.f32.mrb[14].mxu0 }
 0x44c   : > { %v2499_v54 = vpop.f32.mrb[15].mxu0  ;;  %v1482_v55 = vadd.f32 %v1478_v25, %v1477_v50 }
 0x44e   : > { %v1492_v56 = vsel %vm1289_vm5, %v1482_v55, -inf }
 0x44f   : > { %1493 = vmax.xlane.f32.xlu0 %v1492_v56 }
 0x454   : > { %1137 = vrot.lane.b32.xlu1 %v3050_v36, %s2785_s22 }
 0x4cc   : > { %v1485_v57 = vpop.xlane.xlu1 %1484 }
 0x4cd   : > { %v1495_v58 = vsub.f32 %v1479_v34, %v1485_v57 }
 0x4cf   : > { %v1499_v59 = vmul.f32 1.442695, %v1495_v58 }
 0x4d0   : > { %v1491_v5 = vpop.xlane.xlu1 %1490 }
 0x4d1   : > { %2660 = vpow2.f32 %v1499_v59  ;;  %v1497_v6 = vsub.f32 %v1481_v37, %v1491_v5 }
 0x4d3   : > { %v1503_v8 = vmul.f32 1.442695, %v1497_v6 }
 0x4d4   : > { %v1488_v60 = vpop.xlane.xlu0 %1487 }
 0x4d5   : > { %v1496_v61 = vsub.f32 %v1480_v47, %v1488_v60 }
 0x4d7   : > { %v1501_v62 = vmul.f32 1.442695, %v1496_v61 }
 0x4d9   : > { %2662 = vpow2.f32 %v1501_v62 }
 0x4db   : > { %v3134_v0 = vpop.eup %2660 }
 0x4dc   : > { %v1507_v1 = vsel %vm1289_vm5, %v3134_v0, 0.0  ;;  %v1494_v36 = vpop.xlane.xlu0 %1493 }
 0x4dd   : > { %1508 = vadd.xlane.f32.xlu1 %v1507_v1  ;;  %v1498_v4 = vsub.f32 %v1482_v55, %v1494_v36 }
 0x4df   : > { %v1505_v7 = vmul.f32 1.442695, %v1498_v4 }
 0x4e1   : > { %2664 = vpow2.f32 %v1505_v7 }
 0x4e2   : > { %2666 = vpow2.f32 %v1503_v8 }
 0x4e3   : > { %v3138_v2 = vpop.eup %2662 }
 0x4e4   : > { %v1510_v3 = vsel %vm1289_vm5, %v3138_v2, 0.0 }
 0x4e5   : > { %1511 = vadd.xlane.f32.xlu0 %v1510_v3 }
 0x4eb   : > { %v3145_v9 = vpop.eup %2664 }
 0x4ec   : > { %v1516_v10 = vsel %vm1289_vm5, %v3145_v9, 0.0  ;;  %v3149_v11 = vpop.eup %2666 }
 0x4ee   : > { %1141 = vrot.lane.b32.xlu1 %v3059_v41, %s2785_s22  ;;  %v1513_v41 = vsel %vm1289_vm5, %v3149_v11, 0.0 }
 0x4f2   : > { %1143 = vrot.lane.b32.xlu1 %v3062_v42, %s2785_s22 }
 0x4fb   : > { %1139 = vrot.lane.b32.xlu0 %v3056_v40, %s2785_s22  ;;  %v1138_v40 = vpop.permute.xlu1 %1137  ;;  %s2427_s22 = sshll.u32 %s3407_s27, 7 }
 0x4fc   : > { %s3274_s7 = scalar_lea.hbm %s3411_s21, %s2427_s22 }
 0x516   : > { %1517 = vadd.xlane.f32.xlu1 %v1516_v10 }
 0x51a   : > { %1514 = vadd.xlane.f32.xlu0 %v1513_v41 }
 0x56a   : > { %v1509_v42 = vpop.xlane.xlu1 %1508 }
 0x56b   : > { %2668 = vrcp.f32 %v1509_v42 }
 0x56e   : > { %v1142_v12 = vpop.permute.xlu1 %1141 }
 0x56f   : > { %v1149_v15 = vcombine.low %v1138_v40, %v1142_v12  ;;  %v1150_v16 = vcombine.high %v1138_v40, %v1142_v12 }
 0x571   : > { %v1157_v21 = vrot.slane %v1149_v15, %v3069_v53  ;;  %v1164_v23 = vrot.slane %v1150_v16, %v3069_v53 }
 0x572   : > { %v1512_v13 = vpop.xlane.xlu0 %1511  ;;  %v1144_v17 = vpop.permute.xlu1 %1143 }
 0x573   : > { %2670 = vrcp.f32 %v1512_v13 }
 0x575   : > { %v2669_v50 = vpop.eup %2668 }
 0x576   : > { %v1140_v18 = vpop.permute.xlu0 %1139  ;;  %v1523_v61 = vmul.f32 %v2669_v50, %v3134_v0 }
 0x577   : > { %v1165_v19 = vcombine.low %v1140_v18, %v1144_v17  ;;  %v1166_v20 = vcombine.high %v1140_v18, %v1144_v17 }
 0x578   : > { %v1527_v7 = vpack.c.bf16 %v1523_v61, %v1523_v61 }
 0x579   : > { %v1173_v24 = vrot.slane %v1165_v19, %v3069_v53  ;;  %v1180_v25 = vrot.slane %v1166_v20, %v3069_v53 }
 0x57b   : > { %v1181_v26 = vcombine.low %v1157_v21, %v1173_v24  ;;  %v1182_v27 = vcombine.high %v1157_v21, %v1173_v24  ;;  %v1197_v28 = vcombine.low %v1164_v23, %v1180_v25  ;;  %v1198_v29 = vcombine.high %v1164_v23, %v1180_v25 }
 0x57d   : > { %v1189_v30 = vrot.slane %v1181_v26, %v3079_v63  ;;  %v1196_v31 = vrot.slane %v1182_v27, %v3079_v63  ;;  %v1205_v32 = vrot.slane %v1197_v28, %v3079_v63  ;;  %v1212_v33 = vrot.slane %v1198_v29, %v3079_v63  ;;  %v2671_v56 = vpop.eup %2670 }
 0x57e   : > { %v1524_v62 = vmul.f32 %v2671_v56, %v3138_v2 }
 0x57f   : > { %v1217_v34 = vcombine.low %v1189_v30, %v1196_v31  ;;  %v2395_v35 = vcombine.high %v1189_v30, %v1196_v31  ;;  %v1233_v37 = vcombine.low %v1205_v32, %v1212_v33  ;;  %v2396_v38 = vcombine.high %v1205_v32, %v1212_v33 }
 0x580   : > { %v1528_v8 = vpack.c.bf16 %v1524_v62, %v1524_v62 }
 0x581   : > { %v1224_v39 = vrot.slane %v1217_v34, %v3069_v53  ;;  %v1232_v43 = vrot.slane %v2395_v35, %v3069_v53  ;;  %v1240_v44 = vrot.slane %v1233_v37, %v3069_v53  ;;  %v1248_v45 = vrot.slane %v2396_v38, %v3069_v53 }
 0x583   : > { %v1249_v46 = vcombine.low %v1224_v39, %v1232_v43  ;;  %v1265_v47 = vcombine.low %v1240_v44, %v1248_v45  ;;  %v1250_v48 = vcombine.high %v1224_v39, %v1232_v43  ;;  %v1266_v49 = vcombine.high %v1240_v44, %v1248_v45  ;;  %v2646_v44 = vld [vmem:[%s2975_s17] sm:$0xff]  }
 0x585   : > { %v1257_v51 = vrot.slane %v1249_v46, %v3079_v63  ;;  %v1273_v52 = vrot.slane %v1265_v47, %v3079_v63  ;;  %v1264_v54 = vrot.slane %v1250_v48, %v3079_v63  ;;  %v1280_v55 = vrot.slane %v1266_v49, %v3079_v63 }
 0x587   : > { %v1281_v57 = vcombine.low %v1257_v51, %v1273_v52  ;;  %v1282_v58 = vcombine.high %v1257_v51, %v1273_v52  ;;  %v1283_v59 = vcombine.low %v1264_v54, %v1280_v55  ;;  %v1284_v60 = vcombine.high %v1264_v54, %v1280_v55  ;;  %v2647_v54 = vld [vmem:[%s2975_s17 + $0x8] sm:$0xff]   ;;  %s2786_s17 = smov 16  }
 0x589   : > { %v1285_v1 = vpack.c.bf16 %v1281_v57, %v1281_v57  ;;  %v1286_v3 = vpack.c.bf16 %v1282_v58, %v1282_v58  ;;  %v1287_v5 = vpack.c.bf16 %v1283_v59, %v1283_v59  ;;  %v1288_v6 = vpack.c.bf16 %v1284_v60, %v1284_v60 }
 0x58b   : > { %v1536_v36 = vsel %vm1534_vm6, %v1285_v1, 0  ;;  %v1582_v4 = vsel %vm1534_vm6, %v1286_v3, 0  ;;  %v1628_v0 = vsel %vm1534_vm6, %v1287_v5, 0  ;;  %v1674_v2 = vsel %vm1534_vm6, %v1288_v6, 0 }
 0x58c   : > { %2501 = vmatpush3.bf16.msra.mxu1 %v1536_v36  ;;  %2507 = vmatpush3.bf16.msra.mxu0 %v1582_v4 }
 0x58d   : > { %2512 = vmatprep.subr.bf16.mxu1 %v2777_v22  ;;  %2518 = vmatprep.subr.bf16.mxu0 %v2777_v22 }
 0x58f   : > { %2503 = vmatmul.mubr.msk.bf16.vlgmr.msra.gmra.mrb[4].mxu1 %vm1289_vm5, %v1527_v7  ;;  %2509 = vmatmul.mubr.msk.bf16.vlgmr.msra.gmra.mrb[16].mxu0 %vm1289_vm5, %v1528_v8 }
 0x590   : > { %2513 = vmatpush3.bf16.msra.mxu1 %v1628_v0  ;;  %2519 = vmatpush3.bf16.msra.mxu0 %v1674_v2 }
 0x591   : > { %2520 = vmatprep.mubr.msk.bf16.mxu0 %vm2778_vm4, %v2777_v22  ;;  %2514 = vmatprep.mubr.msk.bf16.mxu1 %vm2778_vm4, %v2777_v22 }
 0x592   : > { %2524 = vmatprep.subr.bf16.mxu1 %v2777_v22  ;;  %2532 = vmatprep.subr.bf16.mxu0 %v2777_v22 }
 0x5a3   : > { %v1518_v10 = vpop.xlane.xlu1 %1517 }
 0x5a4   : > { %2672 = vrcp.f32 %v1518_v10 }
 0x5a7   : > { %v1515_v41 = vpop.xlane.xlu0 %1514 }
 0x5a8   : > { %2674 = vrcp.f32 %v1515_v41 }
 0x5ae   : > { %v2673_v40 = vpop.eup %2672 }
 0x5af   : > { %v1526_v42 = vmul.f32 %v2673_v40, %v3145_v9 }
 0x5b1   : > { %v1530_v12 = vpack.c.bf16 %v1526_v42, %v1526_v42 }
 0x5b2   : > { %v2675_v13 = vpop.eup %2674 }
 0x5b3   : > { %v1525_v15 = vmul.f32 %v2675_v13, %v3149_v11  ;;  %2521 = vmatmul.mubr.msk.bf16.vlgmr.msra.gmra.mrb[20].mxu0 %vm1289_vm5, %v1530_v12 }
 0x5b4   : > { %2536 = vmatprep.mubr.msk.bf16.mxu0 %vm2778_vm4, %v2777_v22 }
 0x5b5   : > { %v1529_v16 = vpack.c.bf16 %v1525_v15, %v1525_v15 }
 0x5b7   : > { %2515 = vmatmul.mubr.msk.bf16.vlgmr.msra.gmra.mrb[8].mxu1 %vm1289_vm5, %v1529_v16  ;;  %v2407_v16 = vld [vmem:[%s3403_s20] ss:$0 sm:$0xff] }
 0x5b8   : > { %2528 = vmatprep.mubr.msk.bf16.mxu1 %vm2778_vm4, %v2777_v22  ;;  %2525 = vmatpush3.bf16.msra.mxu1 %v2646_v44  ;;  %v2651_v44 = vld [vmem:[%s3006_s9 + $0x8] sm:$0xff]  }
 0x5b9   : > { %2526 = vmatprep.subr.bf16.mxu1 %v2777_v22 }
 0x5bc   : > { %2527 = vmatpush3.bf16.msra.mxu1 %v2647_v54 }
 0x5bd   : > { %2540 = vmatprep.subr.bf16.mxu1 %v2777_v22 }
 0x662   : > { %v1572_v17 = vpop.f32.mrb[4].mxu1  ;;  %v1618_v18 = vpop.f32.mrb[16].mxu0 }
 0x663   : > { %v2504_v19 = vpop.f32.mrb[5].mxu1  ;;  %v2510_v20 = vpop.f32.mrb[17].mxu0 }
 0x664   : > { %v1575_v9 = vpop.f32.mrb[6].mxu1  ;;  %v1621_v21 = vpop.f32.mrb[18].mxu0 }
 0x665   : > { %v2505_v23 = vpop.f32.mrb[7].mxu1  ;;  %v2511_v24 = vpop.f32.mrb[19].mxu0 }
 0x686   : > { %v1710_v11 = vpop.f32.mrb[20].mxu0 }
 0x687   : > { %v1732_v25 = vcombine.low %v1618_v18, %v1710_v11  ;;  %v1733_v26 = vcombine.high %v1618_v18, %v1710_v11  ;;  %v2522_v27 = vpop.f32.mrb[21].mxu0 }
 0x688   : > { %v1713_v28 = vpop.f32.mrb[22].mxu0 }
 0x689   : > { %v2523_v29 = vpop.f32.mrb[23].mxu0  ;;  %v1740_v35 = vrot.slane %v1732_v25, %v3069_v53  ;;  %v1747_v37 = vrot.slane %v1733_v26, %v3069_v53  ;;  %v2648_v28 = vld [vmem:[%s2992_s18] sm:$0xff]  }
 0x68a   : > { %v1664_v30 = vpop.f32.mrb[8].mxu1  ;;  %2533 = vmatpush3.bf16.msra.mxu0 %v2648_v28  ;;  %v2650_v29 = vld [vmem:[%s3006_s9] sm:$0xff]  }
 0x68b   : > { %v1716_v31 = vcombine.low %v1572_v17, %v1664_v30  ;;  %v1717_v32 = vcombine.high %v1572_v17, %v1664_v30  ;;  %v2516_v33 = vpop.f32.mrb[9].mxu1  ;;  %2534 = vmatprep.subr.bf16.mxu0 %v2777_v22 }
 0x68c   : > { %v1667_v34 = vpop.f32.mrb[10].mxu1 }
 0x68d   : > { %v1724_v38 = vrot.slane %v1716_v31, %v3069_v53  ;;  %v1731_v39 = vrot.slane %v1717_v32, %v3069_v53  ;;  %v2517_v43 = vpop.f32.mrb[11].mxu1  ;;  %v2411_v34 = vld [vmem:[%s3405_s30] ss:$0 sm:$0xff] }
 0x68f   : > { %v1748_v45 = vcombine.low %v1724_v38, %v1740_v35  ;;  %v1749_v46 = vcombine.high %v1724_v38, %v1740_v35  ;;  %v1764_v47 = vcombine.low %v1731_v39, %v1747_v37  ;;  %v1765_v48 = vcombine.high %v1731_v39, %v1747_v37  ;;  %v2412_v37 = vld [vmem:[%s691_s0] ss:$0 sm:$0xff] }
 0x691   : > { %v1756_v49 = vrot.slane %v1748_v45, %v3079_v63  ;;  %v1763_v50 = vrot.slane %v1749_v46, %v3079_v63  ;;  %v1772_v51 = vrot.slane %v1764_v47, %v3079_v63  ;;  %v1779_v52 = vrot.slane %v1765_v48, %v3079_v63  ;;  %v2652_v45 = vld [vmem:[%s3006_s9 + $0x10] sm:$0xff]   ;;  %v2653_v46 = vld [vmem:[%s3006_s9 + $0x18] sm:$0xff]   ;;  %v2654_v47 = vld [vmem:[%s3006_s9 + $0x20] sm:$0xff]  }
 0x692   : > { %v2655_v48 = vld [vmem:[%s3006_s9 + $0x28] sm:$0xff]  }
 0x693   : > { %v1784_v55 = vcombine.low %v1756_v49, %v1763_v50  ;;  %v2405_v56 = vcombine.high %v1756_v49, %v1763_v50  ;;  %v1800_v57 = vcombine.low %v1772_v51, %v1779_v52  ;;  %v2406_v58 = vcombine.high %v1772_v51, %v1779_v52  ;;  %v2656_v49 = vld [vmem:[%s3006_s9 + $0x30] sm:$0xff]   ;;  %v2657_v50 = vld [vmem:[%s3006_s9 + $0x38] sm:$0xff]   ;;  %v2413_v51 = vld [vmem:[%s699_s5] ss:$0 sm:$0xff]  ;;  %s3408_s9 = sld [smem:[#allocation7_spill]] }
 0x695   : > { %v1791_v59 = vrot.slane %v1784_v55, %v3069_v53  ;;  %v1799_v60 = vrot.slane %v2405_v56, %v3069_v53  ;;  %v1807_v61 = vrot.slane %v1800_v57, %v3069_v53  ;;  %v1815_v62 = vrot.slane %v2406_v58, %v3069_v53 }
 0x697   : > { %v1817_v1 = vcombine.high %v1791_v59, %v1799_v60  ;;  %v1833_v3 = vcombine.high %v1807_v61, %v1815_v62  ;;  %v1816_v36 = vcombine.low %v1791_v59, %v1799_v60  ;;  %v1832_v4 = vcombine.low %v1807_v61, %v1815_v62 }
 0x699   : > { %v1831_v5 = vrot.slane %v1817_v1, %v3079_v63  ;;  %v1847_v6 = vrot.slane %v1833_v3, %v3079_v63  ;;  %v1824_v7 = vrot.slane %v1816_v36, %v3079_v63  ;;  %v1840_v8 = vrot.slane %v1832_v4, %v3079_v63 }
 0x69b   : > { %v1850_v0 = vcombine.low %v1831_v5, %v1847_v6  ;;  %v1849_v2 = vcombine.high %v1824_v7, %v1840_v8  ;;  %v1851_v10 = vcombine.high %v1831_v5, %v1847_v6  ;;  %v1848_v41 = vcombine.low %v1824_v7, %v1840_v8  ;;  %v2417_v5 = vld [vmem:[%s707_s8] ss:$0 sm:$0xff]  ;;  %s3413_s8 = sand.u32 1, %s3408_s9  }
 0x69c   : > { %s2157_s16 = scalar_lea.sflag [#allocation4], %s3413_s8 }
 0x69d   : > { %1857 = vrot.lane.b32.xlu1 %v1850_v0, %s2786_s17  ;;  %1853 = vrot.lane.b32.xlu0 %v1849_v2, %s2787_s14  ;;  %s2170_s17 = sshll.u32 %s3008_s13, 4  ;;  %s3276_s17 = int_to_ptr.vmem [resolvable:$true] %s2170_s17 }
 0x69e   : > { %s2680_s20 = scalar_lea.vmem %s3276_s17, 128  ;;  %p2687_p5 = scmp.lt.s32.totalorder %s3276_s17, %s2685_s23 }
 0x69f   : > { %p2681_p1 = scmp.ne.s32.totalorder %s3276_s17, %s2680_s20  ;;  %p2688_p6 = scmp.lt.s32.totalorder %s2686_s24, %s2680_s20 }
 0x6a1   : > { %1861 = vrot.lane.b32.xlu0 %v1851_v10, %s2788_s2  ;;  %p2682_p2 = pnand %p2681_p1, %p2919_p3  ;;  %p2689_p7 = por %p2688_p6, %p2687_p5 }
 0x6a3   : > { %p2683_p4 = pneg %p2682_p2 }
 0x6a5   : > { %p2690_p8 = pnand %p2689_p7, %p2683_p4 }
 0x70f   : > { %v1854_v53 = vpop.permute.xlu0 %1853  ;;  %v1858_v40 = vpop.permute.xlu1 %1857 }
 0x710   : > { %v1864_v42 = vsel %vm1289_vm5, %v1848_v41, %v1854_v53 }
 0x711   : > { %v1866_v13 = vsel %vm1865_vm7, %v1864_v42, %v1858_v40 }
 0x713   : > { %v1862_v12 = vpop.permute.xlu0 %1861 }
 0x714   : > { %v1868_v63 = vsel %vm1867_vm8, %v1866_v13, %v1862_v12 }
 0x715   : > { %v1869_v15 = vpack.c.bf16 %v1868_v63, %v1868_v63 }
 0x717   : > { %2529 = vmatmul.mubr.msk.bf16.vlgmr.msra.gmra.mrb[12].mxu1 %vm739_vm3, %v1869_v15 }
 0x718   : > { %2556 = vmatprep.mubr.msk.bf16.mxu1 %vm2778_vm4, %v2777_v22  ;;  %2541 = vmatpush3.bf16.msra.mxu1 %v2650_v29 }
 0x719   : > { %2542 = vmatprep.subr.bf16.mxu1 %v2777_v22 }
 0x71c   : > { %2543 = vmatpush3.bf16.msra.mxu1 %v2651_v44 }
 0x71d   : > { %2544 = vmatprep.subr.bf16.mxu1 %v2777_v22 }
 0x720   : > { %2545 = vmatpush3.bf16.msra.mxu1 %v2652_v45 }
 0x721   : > { %2546 = vmatprep.subr.bf16.mxu1 %v2777_v22 }
 0x724   : > { %2547 = vmatpush3.bf16.msra.mxu1 %v2653_v46 }
 0x725   : > { %2548 = vmatprep.subr.bf16.mxu1 %v2777_v22 }
 0x728   : > { %2549 = vmatpush3.bf16.msra.mxu1 %v2654_v47 }
 0x729   : > { %2550 = vmatprep.subr.bf16.mxu1 %v2777_v22 }
 0x72c   : > { %2551 = vmatpush3.bf16.msra.mxu1 %v2655_v48 }
 0x72d   : > { %2552 = vmatprep.subr.bf16.mxu1 %v2777_v22 }
 0x730   : > { %2553 = vmatpush3.bf16.msra.mxu1 %v2656_v49 }
 0x731   : > { %2554 = vmatprep.subr.bf16.mxu1 %v2777_v22 }
 0x734   : > { %2555 = vmatpush3.bf16.msra.mxu1 %v2657_v50 }
 0x7ea   : > { %v1930_v17 = vpop.f32.mrb[12].mxu1 }
 0x7eb   : > { %v1931_v18 = vadd.f32 %v2407_v16, %v1930_v17  ;;  %v2530_v19 = vpop.f32.mrb[13].mxu1 }
 0x7ec   : > { %v1933_v20 = vpop.f32.mrb[14].mxu1 }
 0x7ed   : > { %v3223_v9 = vadd.f32 %v1931_v18, %v3016_v14  ;;  %v2531_v21 = vpop.f32.mrb[15].mxu1  ;;  %v2649_v14 = vld [vmem:[%s2992_s18 + $0x8] sm:$0xff]  }
 0x7ee   : > { %2535 = vmatpush3.bf16.msra.mxu0 %v2649_v14 }
 0x7ef   : > { %v1939_v23 = vsel %vm739_vm3, %v3223_v9, 0.0 }
 0x7f0   : > { %1940 = vadd.xlane.f32.xlu1 %v1939_v23 }
 0x87d   : > { %v1941_v24 = vpop.xlane.xlu1 %1940 }
 0x87e   : > { %v1942_v11 = vmul.f32 0.03125, %v1941_v24 }
 0x880   : > { %v1943_v25 = vsub.f32 %v3223_v9, %v1942_v11 }
 0x882   : > { %v1944_v26 = vmul.f32 %v1943_v25, %v1943_v25 }
 0x884   : > { %v1945_v27 = vsel %vm739_vm3, %v1944_v26, 0.0 }
 0x885   : > { %1946 = vadd.xlane.f32.xlu0 %v1945_v27 }
 0x912   : > { %v1947_v30 = vpop.xlane.xlu0 %1946 }
 0x913   : > { %v1948_v31 = vmul.f32 0.03125, %v1947_v30 }
 0x915   : > { %v1949_v32 = vadd.f32 1e-05, %v1948_v31 }
 0x917   : > { %2676 = vrsqrt.f32 %v1949_v32 }
 0x921   : > { %v2677_v33 = vpop.eup %2676 }
 0x922   : > { %v1951_v35 = vmul.f32 %v2677_v33, %v1943_v25 }
 0x924   : > { %v1958_v38 = vmul.f32 %v2411_v34, %v1951_v35 }
 0x926   : > { %v1965_v39 = vadd.f32 %v2412_v37, %v1958_v38 }
 0x928   : > { %v1966_v43 = vpack.c.bf16 %v1965_v39, %v1965_v39 }
 0x92a   : > { %2537 = vmatmul.mubr.msk.bf16.vlgmr.msra.gmra.mrb[24].mxu0 %vm739_vm3, %v1966_v43 }
 0x9fd   : > { %v2027_v52 = vpop.f32.mrb[24].mxu0 }
 0x9fe   : > { %v2028_v54 = vadd.f32 %v2413_v51, %v2027_v52  ;;  %v2538_v55 = vpop.f32.mrb[25].mxu0 }
 0x9ff   : > { %v2030_v56 = vpop.f32.mrb[26].mxu0 }
 0xa00   : > { %v2034_v57 = vmul.f32 %v2028_v54, %v2028_v54  ;;  %v2539_v58 = vpop.f32.mrb[27].mxu0  ;;  %v2033_v1 = vmul.f32 0.5, %v2028_v54 }
 0xa02   : > { %v2035_v59 = vmul.f32 %v2034_v57, %v2028_v54 }
 0xa04   : > { %v2036_v60 = vmul.f32 0.044715, %v2035_v59 }
 0xa06   : > { %v2037_v61 = vadd.f32 %v2036_v60, %v2028_v54 }
 0xa08   : > { %v2038_v62 = vmul.f32 0.7978846, %v2037_v61 }
 0xa0a   : > { %2678 = vtanh.f32 %v2038_v62 }
 0xa14   : > { %v2679_v22 = vpop.eup %2678 }
 0xa15   : > { %v2040_v3 = vadd.f32 1.0, %v2679_v22 }
 0xa17   : > { %v2041_v36 = vmul.f32 %v2040_v3, %v2033_v1 }
 0xa19   : > { %v2042_v4 = vpack.c.bf16 %v2041_v36, %v2041_v36 }
 0xa1b   : > { %2557 = vmatmul.mubr.bf16.vlgmr.msra.gmra.mrb[16].mxu1 %v2042_v4 }
 0xaee   : > { %v2148_v6 = vpop.f32.mrb[16].mxu1 }
 0xaef   : > { %v2149_v7 = vadd.f32 %v2417_v5, %v2148_v6  ;;  %v2558_v8 = vpop.f32.mrb[17].mxu1 }
 0xaf0   : > { %v2151_v0 = vpop.f32.mrb[18].mxu1 }
 0xaf1   : > { %v2154_v2 = vadd.f32 %v2149_v7, %v3223_v9  ;;  %v2559_v10 = vpop.f32.mrb[19].mxu1 }
 0xaf3   : > { %2155 = vst.msk [vmem:[%s3008_s13] sm:$0xff] %vm739_vm3, %v2154_v2 }
 0xaf4   : > { %2693 = shalt.err (!%p2690_p8)
}
 0xaf5   : > { %s2694_s13 = scalar_lea.hbm %s3274_s7, 128  ;;  %s2698_s26 = scalar_lea.hbm %s3412_s29, 256 }
 0xaf6   : > { %p2695_p10 = scmp.ne.s32.totalorder %s3274_s7, %s2694_s13  ;;  %p2699_p13 = scmp.lt.u32.totalorder %s3274_s7, %s3412_s29 }
 0xaf7   : > { %p2700_p0 = scmp.lt.u32.totalorder %s2698_s26, %s2694_s13  ;;  %p2702_p2 = scmp.lt.u32.totalorder %s2694_s13, %s3274_s7 }
 0xaf8   : > { %p2696_p11 = pnand %p2695_p10, %p2919_p3 }
 0xaf9   : > { %p2701_p1 = por %p2700_p0, %p2699_p13 }
 0xafa   : > { %p2697_p12 = pneg %p2696_p11 }
 0xafb   : > { %p2703_p4 = por %p2702_p2, %p2701_p1 }
 0xafd   : > { %p2704_p5 = pnand %p2703_p4, %p2697_p12 }
 0xaff   : > { %2707 = shalt.err (!%p2704_p5)
}
 0xb00   : > { %2560 = dma.vmem_to_hbm [thread:$0]  (%p2919_p3), %s3276_s17, 128, %s3274_s7, %s2157_s16  }
 0xb01 PF: > { %s3414_s28 = sld [smem:[#allocation13_spill]]  ;;  %s3415_s27 = sld [smem:[#allocation6_spill]] }
 0xb07   : > { %p2566_p6 = scmp.ge.s32.totalorder %s3414_s28, 2  ;;  %s2182_s5 = sand.u32 1, %s3415_s27  }
 0xb08   : > { %s2183_s15 = scalar_lea.sflag [#allocation4], %s2182_s5 }
 0xb09   : > { %p2563_p7 = pnand %p2566_p6, %p2929_p9 }
 0xb0b   : > { %2741 = dma.done.wait (!%p2563_p7), %s2183_s15, 128  }
 0xb0c   : > { %2743 = vsyncadd (!%p2563_p7), %s2183_s15, 4294967168  ;;  %s28_s25 = sadd.s32 1, %s3414_s28   ;;  %s3417_s18 = sld [smem:[#allocation7_spill]] }
 0xb0d   : > { %p25_p8 = scmp.ge.s32.totalorder %s28_s25, 6   ;;  %s3418_s19 = sld [smem:[#allocation8_spill]] }
 0xb0e   : > { %s3419_s20 = sld [smem:[#allocation18_spill]]  ;;  %s3420_s21 = sld [smem:[#allocation11_spill]] }
 0xb0f   : > { %s3421_s22 = sld [smem:[#allocation12_spill]]  ;;  %s3422_s23 = sld [smem:[#allocation14_spill]] }
 0xb10   : > { %s3423_s24 = sld [smem:[#allocation16_spill]]  ;;  %27 = sbr.rel (!%p25_p8) target bundleno = 17 (0x11), region = 158 }
 0xb17   :  { %2188 = vsyncpa [#allocation4], 1 }
 0xb18   :  { %2190 = vsyncpa [#allocation4 + $0x1], 1 }

</bundles_post_ra>
